<compile_context>
chip_gen: v5e
topology: v5e:2x2
jax: 0.10.0
libtpu: 0.0.40
codegen_flags: <defaults>
</compile_context>

<pallas_src>
import functools
import math

import jax
import jax.numpy as jnp
from jax import lax
from jax.experimental import pallas as pl
from jax.experimental.pallas import tpu as pltpu

EMBED_DIM = 128
NUM_HEADS = 4
HEAD_DIM = EMBED_DIM // NUM_HEADS
HIDDEN_DIM = 256
NUM_LAYERS = 2
LN_EPS = 1e-5
CLS_PAD = 128          # classifier output padded to a full lane width


# ----------------------------- Pallas kernel -------------------------------

def _layer_norm(x, g, b):
    mean = jnp.mean(x, axis=-1, keepdims=True)
    var = jnp.mean(jnp.square(x - mean), axis=-1, keepdims=True)
    return (x - mean) * lax.rsqrt(var + LN_EPS) * g + b


def fused_forward_kernel(x_ref,
                         wqkv_ref, bqkv_ref, wo_ref, bo_ref,
                         w1_ref, b1_ref, w2_ref, b2_ref,
                         ln1g_ref, ln1b_ref, ln2g_ref, ln2b_ref,
                         cw_ref, cb_ref,
                         o_ref,
                         ctx_scratch,
                         *, batch, seq):
    rows = batch * seq
    x = x_ref[...]                                          # (B*S, E) f32

    # Block-diagonal additive attention bias built in-kernel (no quadratic HBM input).
    # batch id = floor((i + 0.5) / S) in f32: avoids vector integer division, exact
    # for any realistic row count (margin 0.5/S >> f32 rounding error).
    ri = lax.broadcasted_iota(jnp.int32, (rows, rows), 0).astype(jnp.float32)
    ci = lax.broadcasted_iota(jnp.int32, (rows, rows), 1).astype(jnp.float32)
    inv_s = 1.0 / float(seq)
    same_batch = jnp.floor((ri + 0.5) * inv_s) == jnp.floor((ci + 0.5) * inv_s)
    mask = jnp.where(same_batch, 0.0, -1e30).astype(jnp.float32)

    for l in range(NUM_LAYERS):                             # static, fully unrolled
        # ---- multi-head self-attention (post-norm), batch folded into rows ----
        xb = x.astype(jnp.bfloat16)
        # fused QKV: one lane-dense (B*S,E)@(E,3E) matmul + one (1,3E) bias add.
        # 1/sqrt(head_dim) is already folded into the Q columns of wqkv / bqkv.
        qkv = jnp.dot(xb, wqkv_ref[l],
                      preferred_element_type=jnp.float32) + bqkv_ref[l]   # (B*S, 3E)

        for h in range(NUM_HEADS):                          # static head loop
            q_h = qkv[:, h * HEAD_DIM:(h + 1) * HEAD_DIM]
            k_h = qkv[:, EMBED_DIM + h * HEAD_DIM:EMBED_DIM + (h + 1) * HEAD_DIM]
            v_h = qkv[:, 2 * EMBED_DIM + h * HEAD_DIM:2 * EMBED_DIM + (h + 1) * HEAD_DIM]

            s = jnp.einsum('md,nd->mn',
                           q_h.astype(jnp.bfloat16), k_h.astype(jnp.bfloat16),
                           preferred_element_type=jnp.float32) + mask     # (B*S, B*S) f32
            m = jnp.max(s, axis=-1, keepdims=True)
            e = jnp.exp(s - m)
            p = e * pl.reciprocal(jnp.sum(e, axis=-1, keepdims=True), approx=True)

            ctx_h = jnp.dot(p.astype(jnp.bfloat16), v_h.astype(jnp.bfloat16),
                            preferred_element_type=jnp.float32)           # (B*S, Hd)
            # assemble the (B*S, E) context slab at static lane offsets
            ctx_scratch[:, h * HEAD_DIM:(h + 1) * HEAD_DIM] = ctx_h

        # fused out-projection: one dense K=E matmul over the assembled ctx slab
        attn = jnp.dot(ctx_scratch[...].astype(jnp.bfloat16), wo_ref[l],
                       preferred_element_type=jnp.float32) + bo_ref[l]

        x = _layer_norm(x + attn, ln1g_ref[l], ln1b_ref[l])

        # ---- feed-forward (relu) ----
        xb = x.astype(jnp.bfloat16)
        h1 = jnp.maximum(
            jnp.dot(xb, w1_ref[l], preferred_element_type=jnp.float32) + b1_ref[l], 0.0)
        h2 = jnp.dot(h1.astype(jnp.bfloat16), w2_ref[l],
                     preferred_element_type=jnp.float32) + b2_ref[l]

        x = _layer_norm(x + h2, ln2g_ref[l], ln2b_ref[l])

    # ---- classifier head only on the B CLS rows (seq position 0 per batch) ----
    x_cls = x.reshape(batch, seq, EMBED_DIM)[:, 0, :]        # (B, E)
    o_ref[...] = jnp.dot(x_cls.astype(jnp.bfloat16), cw_ref[...],
                         preferred_element_type=jnp.float32) + cb_ref[...]


# ------------------------------- wrappers ----------------------------------

def small_transformer_forward(token_ids, params, *, num_classes):
    B, S = token_ids.shape
    BS = B * S

    # embedding lookup + positional encoding (glue)
    emb = jnp.take(params["embedding"], token_ids, axis=0)            # (B, S, E)
    x = (emb + params["pos_enc"][:S, :][None, :, :]).reshape(BS, EMBED_DIM)

    operands = (x,
                params["wqkv"], params["bqkv"], params["wo"], params["bo"],
                params["w1"], params["b1"], params["w2"], params["b2"],
                params["ln1g"], params["ln1b"], params["ln2g"], params["ln2b"],
                params["cls_w"], params["cls_b"])

    flops = NUM_LAYERS * (2 * BS * EMBED_DIM * 3 * EMBED_DIM          # fused QKV
                          + NUM_HEADS * 4 * BS * BS * HEAD_DIM        # scores + ctx
                          + 2 * BS * EMBED_DIM * EMBED_DIM            # out-projection
                          + 4 * BS * EMBED_DIM * HIDDEN_DIM) \
        + 2 * B * EMBED_DIM * CLS_PAD                                 # classifier
    transcendentals = NUM_LAYERS * (NUM_HEADS * BS * (BS + 1) + 2 * BS)
    bytes_accessed = sum(math.prod(a.shape) * a.dtype.itemsize for a in operands) \
        + B * CLS_PAD * 4

    out = pl.pallas_call(
        functools.partial(fused_forward_kernel, batch=B, seq=S),
        out_shape=jax.ShapeDtypeStruct((B, CLS_PAD), jnp.float32),
        scratch_shapes=[pltpu.VMEM((BS, EMBED_DIM), jnp.float32)],
        compiler_params=pltpu.CompilerParams(vmem_limit_bytes=32 * 1024 * 1024),
        cost_estimate=pl.CostEstimate(flops=flops,
                                      transcendentals=transcendentals,
                                      bytes_accessed=bytes_accessed),
    )(*operands)

    # CLS logits already computed per batch element inside the kernel
    return out[:, :num_classes]


def positional_encoding(embed_dim, max_length):
    pos = jnp.arange(max_length, dtype=jnp.float32)[:, None]
    i = jnp.arange(embed_dim // 2, dtype=jnp.float32)[None, :]
    angle_rates = 1.0 / (10000.0 ** (2.0 * i / embed_dim))
    ang = pos * angle_rates
    pe = jnp.zeros((max_length, embed_dim), jnp.float32)
    pe = pe.at[:, 0::2].set(jnp.sin(ang))
    pe = pe.at[:, 1::2].set(jnp.cos(ang))
    return pe


# ------------------------------ param init ---------------------------------

def init_params(key, vocab_size, num_classes, max_length=512):
    ks = jax.random.split(key, 2 + 4 * NUM_LAYERS)

    def nrm(k, shape, scale=0.02):
        return scale * jax.random.normal(k, shape, dtype=jnp.float32)

    params = {
        "embedding": jax.random.normal(ks[0], (vocab_size, EMBED_DIM), dtype=jnp.float32),
        "pos_enc": positional_encoding(EMBED_DIM, max_length),
    }

    # classifier weights, lane-padded to CLS_PAD columns (padding columns are zero)
    cw = jnp.zeros((EMBED_DIM, CLS_PAD), jnp.float32)
    cw = cw.at[:, :num_classes].set(nrm(ks[1], (EMBED_DIM, num_classes)))
    params["cls_w"] = cw.astype(jnp.bfloat16)
    params["cls_b"] = jnp.zeros((1, CLS_PAD), jnp.float32)

    q_scale = 1.0 / math.sqrt(HEAD_DIM)
    wqkv, wo, w1, w2 = [], [], [], []
    for l in range(NUM_LAYERS):
        lk = ks[2 + 4 * l: 2 + 4 * (l + 1)]
        # fused QKV weight: columns = [Q | K | V], each block head-major (head h ->
        # columns h*HEAD_DIM : (h+1)*HEAD_DIM). 1/sqrt(head_dim) folded into Q cols.
        w = nrm(lk[0], (EMBED_DIM, 3 * EMBED_DIM))
        w = w.at[:, :EMBED_DIM].multiply(q_scale)
        wqkv.append(w)
        # full out-projection, rows head-major to match the assembled ctx slab
        wo.append(nrm(lk[1], (EMBED_DIM, EMBED_DIM)))
        w1.append(nrm(lk[2], (EMBED_DIM, HIDDEN_DIM)))
        w2.append(nrm(lk[3], (HIDDEN_DIM, EMBED_DIM)))

    params.update(
        wqkv=jnp.stack(wqkv).astype(jnp.bfloat16),   # (L, E, 3E)
        wo=jnp.stack(wo).astype(jnp.bfloat16),       # (L, E, E)
        w1=jnp.stack(w1).astype(jnp.bfloat16),       # (L, E, F)
        w2=jnp.stack(w2).astype(jnp.bfloat16),       # (L, F, E)
        # Q block of the fused bias is also (conceptually) pre-scaled by q_scale;
        # zeros here so it is a no-op.
        bqkv=jnp.zeros((NUM_LAYERS, 1, 3 * EMBED_DIM), jnp.float32),
        bo=jnp.zeros((NUM_LAYERS, 1, EMBED_DIM), jnp.float32),
        b1=jnp.zeros((NUM_LAYERS, 1, HIDDEN_DIM), jnp.float32),
        b2=jnp.zeros((NUM_LAYERS, 1, EMBED_DIM), jnp.float32),
        ln1g=jnp.ones((NUM_LAYERS, 1, EMBED_DIM), jnp.float32),
        ln1b=jnp.zeros((NUM_LAYERS, 1, EMBED_DIM), jnp.float32),
        ln2g=jnp.ones((NUM_LAYERS, 1, EMBED_DIM), jnp.float32),
        ln2b=jnp.zeros((NUM_LAYERS, 1, EMBED_DIM), jnp.float32),
    )
    return params


# --------------------------------- main -------------------------------------

if __name__ == "__main__":
    vocab_size, num_classes = 100, 8
    B, S = 2, 8

    key = jax.random.PRNGKey(0)
    k_params, k_tokens = jax.random.split(key)
    params = init_params(k_params, vocab_size, num_classes)
    tokens = jax.random.randint(k_tokens, (B, S), 0, vocab_size, dtype=jnp.int32)

    fwd = jax.jit(small_transformer_forward, static_argnames=("num_classes",))
    logits = fwd(tokens, params, num_classes=num_classes)
    logits = jax.block_until_ready(logits)

    assert logits.shape == (B, num_classes)
    assert bool(jnp.all(jnp.isfinite(logits)))
    print("KERNEL_OK")
</pallas_src>

<mosaic_0001>
module attributes {stable_mosaic.version = 11 : i64} {
  func.func @fused_forward_kernel(%arg0: memref<16x128xf32, #tpu.memory_space<vmem>>, %arg1: memref<2x128x384xbf16, #tpu.memory_space<vmem>>, %arg2: memref<2x1x384xf32, #tpu.memory_space<vmem>>, %arg3: memref<2x128x128xbf16, #tpu.memory_space<vmem>>, %arg4: memref<2x1x128xf32, #tpu.memory_space<vmem>>, %arg5: memref<2x128x256xbf16, #tpu.memory_space<vmem>>, %arg6: memref<2x1x256xf32, #tpu.memory_space<vmem>>, %arg7: memref<2x256x128xbf16, #tpu.memory_space<vmem>>, %arg8: memref<2x1x128xf32, #tpu.memory_space<vmem>>, %arg9: memref<2x1x128xf32, #tpu.memory_space<vmem>>, %arg10: memref<2x1x128xf32, #tpu.memory_space<vmem>>, %arg11: memref<2x1x128xf32, #tpu.memory_space<vmem>>, %arg12: memref<2x1x128xf32, #tpu.memory_space<vmem>>, %arg13: memref<128x128xbf16, #tpu.memory_space<vmem>>, %arg14: memref<1x128xf32, #tpu.memory_space<vmem>>, %arg15: memref<2x128xf32, #tpu.memory_space<vmem>>, %arg16: memref<16x128xf32, #tpu.memory_space<vmem>>) attributes {dimension_semantics = [], scalar_prefetch = 0 : i64, scratch_operands = 1 : i64, tpu.core_type = #tpu.core_type<tc>} {
    %c0 = arith.constant 0 : index
    %c0_0 = arith.constant 0 : index
    %0 = vector.load %arg0[%c0, %c0_0] : memref<16x128xf32, #tpu.memory_space<vmem>>, vector<16x128xf32>
    %1 = tpu.iota {dimensions = array<i32: 0>} : vector<16x16xi32>
    %2 = arith.sitofp %1 : vector<16x16xi32> to vector<16x16xf32>
    %3 = tpu.iota {dimensions = array<i32: 1>} : vector<16x16xi32>
    %4 = arith.sitofp %3 : vector<16x16xi32> to vector<16x16xf32>
    %cst = arith.constant 5.000000e-01 : f32
    %5 = vector.broadcast %cst : f32 to vector<16x16xf32>
    %6 = arith.addf %2, %5 : vector<16x16xf32>
    %cst_1 = arith.constant 1.250000e-01 : f32
    %7 = vector.broadcast %cst_1 : f32 to vector<16x16xf32>
    %8 = arith.mulf %6, %7 : vector<16x16xf32>
    %9 = math.floor %8 : vector<16x16xf32>
    %cst_2 = arith.constant 5.000000e-01 : f32
    %10 = vector.broadcast %cst_2 : f32 to vector<16x16xf32>
    %11 = arith.addf %4, %10 : vector<16x16xf32>
    %cst_3 = arith.constant 1.250000e-01 : f32
    %12 = vector.broadcast %cst_3 : f32 to vector<16x16xf32>
    %13 = arith.mulf %11, %12 : vector<16x16xf32>
    %14 = math.floor %13 : vector<16x16xf32>
    %15 = arith.cmpf oeq, %9, %14 : vector<16x16xf32>
    %cst_4 = arith.constant 0.000000e+00 : f32
    %cst_5 = arith.constant -1.000000e+30 : f32
    %16 = vector.broadcast %cst_4 : f32 to vector<16x16xf32>
    %17 = vector.broadcast %cst_5 : f32 to vector<16x16xf32>
    %18 = arith.select %15, %16, %17 : vector<16x16xi1>, vector<16x16xf32>
    %19 = arith.truncf %0 : vector<16x128xf32> to vector<16x128xbf16>
    %c0_6 = arith.constant 0 : index
    %c0_7 = arith.constant 0 : index
    %c0_8 = arith.constant 0 : index
    %20 = vector.load %arg1[%c0_6, %c0_7, %c0_8] : memref<2x128x384xbf16, #tpu.memory_space<vmem>>, vector<1x128x384xbf16>
    %21 = vector.shape_cast %20 : vector<1x128x384xbf16> to vector<128x384xbf16>
    %cst_9 = arith.constant dense<0.000000e+00> : vector<16x384xf32>
    %22 = tpu.matmul %19, %21, %cst_9 {dimension_numbers = #tpu.dot_dimension_numbers<[1], [0], [0], [1], [0, 0, 1, 1], [], []>} : vector<16x128xbf16>, vector<128x384xbf16>, vector<16x384xf32> -> vector<16x384xf32>
    %c0_10 = arith.constant 0 : index
    %c0_11 = arith.constant 0 : index
    %c0_12 = arith.constant 0 : index
    %23 = vector.load %arg2[%c0_10, %c0_11, %c0_12] : memref<2x1x384xf32, #tpu.memory_space<vmem>>, vector<1x1x384xf32>
    %24 = vector.shape_cast %23 : vector<1x1x384xf32> to vector<1x384xf32>
    %25 = vector.broadcast %24 : vector<1x384xf32> to vector<16x384xf32>
    %26 = arith.addf %22, %25 : vector<16x384xf32>
    %27 = vector.extract_strided_slice %26 {offsets = [0, 0], sizes = [16, 32], strides = [1, 1]} : vector<16x384xf32> to vector<16x32xf32>
    %28 = vector.extract_strided_slice %26 {offsets = [0, 128], sizes = [16, 32], strides = [1, 1]} : vector<16x384xf32> to vector<16x32xf32>
    %29 = vector.extract_strided_slice %26 {offsets = [0, 256], sizes = [16, 32], strides = [1, 1]} : vector<16x384xf32> to vector<16x32xf32>
    %30 = arith.truncf %27 : vector<16x32xf32> to vector<16x32xbf16>
    %31 = arith.truncf %28 : vector<16x32xf32> to vector<16x32xbf16>
    "tpu.trace_start"() <{level = 10 : i32, message = "md,nd->mn"}> : () -> ()
    %cst_13 = arith.constant dense<0.000000e+00> : vector<16x16xf32>
    %32 = tpu.matmul %30, %31, %cst_13 {dimension_numbers = #tpu.dot_dimension_numbers<[1], [1], [0], [0], [0, 0, 1, 0], [], []>} : vector<16x32xbf16>, vector<16x32xbf16>, vector<16x16xf32> -> vector<16x16xf32>
    "tpu.trace_stop"() : () -> ()
    %33 = arith.addf %32, %18 : vector<16x16xf32>
    %cst_14 = arith.constant dense<0xFF800000> : vector<16xf32>
    %34 = vector.multi_reduction <maximumf>, %33, %cst_14 [1] : vector<16x16xf32> to vector<16xf32>
    %35 = vector.shape_cast %34 : vector<16xf32> to vector<16x1xf32>
    %36 = vector.broadcast %35 : vector<16x1xf32> to vector<16x16xf32>
    %37 = arith.subf %33, %36 : vector<16x16xf32>
    %38 = math.exp %37 : vector<16x16xf32>
    %cst_15 = arith.constant dense<0.000000e+00> : vector<16xf32>
    %39 = vector.multi_reduction <add>, %38, %cst_15 [1] : vector<16x16xf32> to vector<16xf32>
    %40 = vector.shape_cast %39 : vector<16xf32> to vector<16x1xf32>
    %41 = tpu.reciprocal %40 {approx = true} : vector<16x1xf32> -> vector<16x1xf32>
    %42 = vector.broadcast %41 : vector<16x1xf32> to vector<16x16xf32>
    %43 = arith.mulf %38, %42 : vector<16x16xf32>
    %44 = arith.truncf %43 : vector<16x16xf32> to vector<16x16xbf16>
    %45 = arith.truncf %29 : vector<16x32xf32> to vector<16x32xbf16>
    %cst_16 = arith.constant dense<0.000000e+00> : vector<16x32xf32>
    %46 = tpu.matmul %44, %45, %cst_16 {dimension_numbers = #tpu.dot_dimension_numbers<[1], [0], [0], [1], [0, 0, 1, 1], [], []>} : vector<16x16xbf16>, vector<16x32xbf16>, vector<16x32xf32> -> vector<16x32xf32>
    %c0_17 = arith.constant 0 : index
    %c0_18 = arith.constant 0 : index
    %47 = vector.load %arg16[%c0_17, %c0_18] : memref<16x128xf32, #tpu.memory_space<vmem>>, vector<16x32xf32>
    tpu.vector_store %arg16[%c0_17, %c0_18], %46 {strides = array<i32>} : memref<16x128xf32, #tpu.memory_space<vmem>>, vector<16x32xf32>,
    %48 = vector.extract_strided_slice %26 {offsets = [0, 32], sizes = [16, 32], strides = [1, 1]} : vector<16x384xf32> to vector<16x32xf32>
    %49 = vector.extract_strided_slice %26 {offsets = [0, 160], sizes = [16, 32], strides = [1, 1]} : vector<16x384xf32> to vector<16x32xf32>
    %50 = vector.extract_strided_slice %26 {offsets = [0, 288], sizes = [16, 32], strides = [1, 1]} : vector<16x384xf32> to vector<16x32xf32>
    %51 = arith.truncf %48 : vector<16x32xf32> to vector<16x32xbf16>
    %52 = arith.truncf %49 : vector<16x32xf32> to vector<16x32xbf16>
    "tpu.trace_start"() <{level = 10 : i32, message = "md,nd->mn"}> : () -> ()
    %cst_19 = arith.constant dense<0.000000e+00> : vector<16x16xf32>
    %53 = tpu.matmul %51, %52, %cst_19 {dimension_numbers = #tpu.dot_dimension_numbers<[1], [1], [0], [0], [0, 0, 1, 0], [], []>} : vector<16x32xbf16>, vector<16x32xbf16>, vector<16x16xf32> -> vector<16x16xf32>
    "tpu.trace_stop"() : () -> ()
    %54 = arith.addf %53, %18 : vector<16x16xf32>
    %cst_20 = arith.constant dense<0xFF800000> : vector<16xf32>
    %55 = vector.multi_reduction <maximumf>, %54, %cst_20 [1] : vector<16x16xf32> to vector<16xf32>
    %56 = vector.shape_cast %55 : vector<16xf32> to vector<16x1xf32>
    %57 = vector.broadcast %56 : vector<16x1xf32> to vector<16x16xf32>
    %58 = arith.subf %54, %57 : vector<16x16xf32>
    %59 = math.exp %58 : vector<16x16xf32>
    %cst_21 = arith.constant dense<0.000000e+00> : vector<16xf32>
    %60 = vector.multi_reduction <add>, %59, %cst_21 [1] : vector<16x16xf32> to vector<16xf32>
    %61 = vector.shape_cast %60 : vector<16xf32> to vector<16x1xf32>
    %62 = tpu.reciprocal %61 {approx = true} : vector<16x1xf32> -> vector<16x1xf32>
    %63 = vector.broadcast %62 : vector<16x1xf32> to vector<16x16xf32>
    %64 = arith.mulf %59, %63 : vector<16x16xf32>
    %65 = arith.truncf %64 : vector<16x16xf32> to vector<16x16xbf16>
    %66 = arith.truncf %50 : vector<16x32xf32> to vector<16x32xbf16>
    %cst_22 = arith.constant dense<0.000000e+00> : vector<16x32xf32>
    %67 = tpu.matmul %65, %66, %cst_22 {dimension_numbers = #tpu.dot_dimension_numbers<[1], [0], [0], [1], [0, 0, 1, 1], [], []>} : vector<16x16xbf16>, vector<16x32xbf16>, vector<16x32xf32> -> vector<16x32xf32>
    %c0_23 = arith.constant 0 : index
    %c32 = arith.constant 32 : index
    %68 = vector.load %arg16[%c0_23, %c32] : memref<16x128xf32, #tpu.memory_space<vmem>>, vector<16x32xf32>
    tpu.vector_store %arg16[%c0_23, %c32], %67 {strides = array<i32>} : memref<16x128xf32, #tpu.memory_space<vmem>>, vector<16x32xf32>,
    %69 = vector.extract_strided_slice %26 {offsets = [0, 64], sizes = [16, 32], strides = [1, 1]} : vector<16x384xf32> to vector<16x32xf32>
    %70 = vector.extract_strided_slice %26 {offsets = [0, 192], sizes = [16, 32], strides = [1, 1]} : vector<16x384xf32> to vector<16x32xf32>
    %71 = vector.extract_strided_slice %26 {offsets = [0, 320], sizes = [16, 32], strides = [1, 1]} : vector<16x384xf32> to vector<16x32xf32>
    %72 = arith.truncf %69 : vector<16x32xf32> to vector<16x32xbf16>
    %73 = arith.truncf %70 : vector<16x32xf32> to vector<16x32xbf16>
    "tpu.trace_start"() <{level = 10 : i32, message = "md,nd->mn"}> : () -> ()
    %cst_24 = arith.constant dense<0.000000e+00> : vector<16x16xf32>
    %74 = tpu.matmul %72, %73, %cst_24 {dimension_numbers = #tpu.dot_dimension_numbers<[1], [1], [0], [0], [0, 0, 1, 0], [], []>} : vector<16x32xbf16>, vector<16x32xbf16>, vector<16x16xf32> -> vector<16x16xf32>
    "tpu.trace_stop"() : () -> ()
    %75 = arith.addf %74, %18 : vector<16x16xf32>
    %cst_25 = arith.constant dense<0xFF800000> : vector<16xf32>
    %76 = vector.multi_reduction <maximumf>, %75, %cst_25 [1] : vector<16x16xf32> to vector<16xf32>
    %77 = vector.shape_cast %76 : vector<16xf32> to vector<16x1xf32>
    %78 = vector.broadcast %77 : vector<16x1xf32> to vector<16x16xf32>
    %79 = arith.subf %75, %78 : vector<16x16xf32>
    %80 = math.exp %79 : vector<16x16xf32>
    %cst_26 = arith.constant dense<0.000000e+00> : vector<16xf32>
    %81 = vector.multi_reduction <add>, %80, %cst_26 [1] : vector<16x16xf32> to vector<16xf32>
    %82 = vector.shape_cast %81 : vector<16xf32> to vector<16x1xf32>
    %83 = tpu.reciprocal %82 {approx = true} : vector<16x1xf32> -> vector<16x1xf32>
    %84 = vector.broadcast %83 : vector<16x1xf32> to vector<16x16xf32>
    %85 = arith.mulf %80, %84 : vector<16x16xf32>
    %86 = arith.truncf %85 : vector<16x16xf32> to vector<16x16xbf16>
    %87 = arith.truncf %71 : vector<16x32xf32> to vector<16x32xbf16>
    %cst_27 = arith.constant dense<0.000000e+00> : vector<16x32xf32>
    %88 = tpu.matmul %86, %87, %cst_27 {dimension_numbers = #tpu.dot_dimension_numbers<[1], [0], [0], [1], [0, 0, 1, 1], [], []>} : vector<16x16xbf16>, vector<16x32xbf16>, vector<16x32xf32> -> vector<16x32xf32>
    %c0_28 = arith.constant 0 : index
    %c64 = arith.constant 64 : index
    %89 = vector.load %arg16[%c0_28, %c64] : memref<16x128xf32, #tpu.memory_space<vmem>>, vector<16x32xf32>
    tpu.vector_store %arg16[%c0_28, %c64], %88 {strides = array<i32>} : memref<16x128xf32, #tpu.memory_space<vmem>>, vector<16x32xf32>,
    %90 = vector.extract_strided_slice %26 {offsets = [0, 96], sizes = [16, 32], strides = [1, 1]} : vector<16x384xf32> to vector<16x32xf32>
    %91 = vector.extract_strided_slice %26 {offsets = [0, 224], sizes = [16, 32], strides = [1, 1]} : vector<16x384xf32> to vector<16x32xf32>
    %92 = vector.extract_strided_slice %26 {offsets = [0, 352], sizes = [16, 32], strides = [1, 1]} : vector<16x384xf32> to vector<16x32xf32>
    %93 = arith.truncf %90 : vector<16x32xf32> to vector<16x32xbf16>
    %94 = arith.truncf %91 : vector<16x32xf32> to vector<16x32xbf16>
    "tpu.trace_start"() <{level = 10 : i32, message = "md,nd->mn"}> : () -> ()
    %cst_29 = arith.constant dense<0.000000e+00> : vector<16x16xf32>
    %95 = tpu.matmul %93, %94, %cst_29 {dimension_numbers = #tpu.dot_dimension_numbers<[1], [1], [0], [0], [0, 0, 1, 0], [], []>} : vector<16x32xbf16>, vector<16x32xbf16>, vector<16x16xf32> -> vector<16x16xf32>
    "tpu.trace_stop"() : () -> ()
    %96 = arith.addf %95, %18 : vector<16x16xf32>
    %cst_30 = arith.constant dense<0xFF800000> : vector<16xf32>
    %97 = vector.multi_reduction <maximumf>, %96, %cst_30 [1] : vector<16x16xf32> to vector<16xf32>
    %98 = vector.shape_cast %97 : vector<16xf32> to vector<16x1xf32>
    %99 = vector.broadcast %98 : vector<16x1xf32> to vector<16x16xf32>
    %100 = arith.subf %96, %99 : vector<16x16xf32>
    %101 = math.exp %100 : vector<16x16xf32>
    %cst_31 = arith.constant dense<0.000000e+00> : vector<16xf32>
    %102 = vector.multi_reduction <add>, %101, %cst_31 [1] : vector<16x16xf32> to vector<16xf32>
    %103 = vector.shape_cast %102 : vector<16xf32> to vector<16x1xf32>
    %104 = tpu.reciprocal %103 {approx = true} : vector<16x1xf32> -> vector<16x1xf32>
    %105 = vector.broadcast %104 : vector<16x1xf32> to vector<16x16xf32>
    %106 = arith.mulf %101, %105 : vector<16x16xf32>
    %107 = arith.truncf %106 : vector<16x16xf32> to vector<16x16xbf16>
    %108 = arith.truncf %92 : vector<16x32xf32> to vector<16x32xbf16>
    %cst_32 = arith.constant dense<0.000000e+00> : vector<16x32xf32>
    %109 = tpu.matmul %107, %108, %cst_32 {dimension_numbers = #tpu.dot_dimension_numbers<[1], [0], [0], [1], [0, 0, 1, 1], [], []>} : vector<16x16xbf16>, vector<16x32xbf16>, vector<16x32xf32> -> vector<16x32xf32>
    %c0_33 = arith.constant 0 : index
    %c96 = arith.constant 96 : index
    %110 = vector.load %arg16[%c0_33, %c96] : memref<16x128xf32, #tpu.memory_space<vmem>>, vector<16x32xf32>
    tpu.vector_store %arg16[%c0_33, %c96], %109 {strides = array<i32>} : memref<16x128xf32, #tpu.memory_space<vmem>>, vector<16x32xf32>,
    %c0_34 = arith.constant 0 : index
    %c0_35 = arith.constant 0 : index
    %111 = vector.load %arg16[%c0_34, %c0_35] : memref<16x128xf32, #tpu.memory_space<vmem>>, vector<16x128xf32>
    %112 = arith.truncf %111 : vector<16x128xf32> to vector<16x128xbf16>
    %c0_36 = arith.constant 0 : index
    %c0_37 = arith.constant 0 : index
    %c0_38 = arith.constant 0 : index
    %113 = vector.load %arg3[%c0_36, %c0_37, %c0_38] : memref<2x128x128xbf16, #tpu.memory_space<vmem>>, vector<1x128x128xbf16>
    %114 = vector.shape_cast %113 : vector<1x128x128xbf16> to vector<128x128xbf16>
    %cst_39 = arith.constant dense<0.000000e+00> : vector<16x128xf32>
    %115 = tpu.matmul %112, %114, %cst_39 {dimension_numbers = #tpu.dot_dimension_numbers<[1], [0], [0], [1], [0, 0, 1, 1], [], []>} : vector<16x128xbf16>, vector<128x128xbf16>, vector<16x128xf32> -> vector<16x128xf32>
    %c0_40 = arith.constant 0 : index
    %c0_41 = arith.constant 0 : index
    %c0_42 = arith.constant 0 : index
    %116 = vector.load %arg4[%c0_40, %c0_41, %c0_42] : memref<2x1x128xf32, #tpu.memory_space<vmem>>, vector<1x1x128xf32>
    %117 = vector.shape_cast %116 : vector<1x1x128xf32> to vector<1x128xf32>
    %118 = vector.broadcast %117 : vector<1x128xf32> to vector<16x128xf32>
    %119 = arith.addf %115, %118 : vector<16x128xf32>
    %120 = arith.addf %0, %119 : vector<16x128xf32>
    %c0_43 = arith.constant 0 : index
    %c0_44 = arith.constant 0 : index
    %c0_45 = arith.constant 0 : index
    %121 = vector.load %arg9[%c0_43, %c0_44, %c0_45] : memref<2x1x128xf32, #tpu.memory_space<vmem>>, vector<1x1x128xf32>
    %122 = vector.shape_cast %121 : vector<1x1x128xf32> to vector<1x128xf32>
    %c0_46 = arith.constant 0 : index
    %c0_47 = arith.constant 0 : index
    %c0_48 = arith.constant 0 : index
    %123 = vector.load %arg10[%c0_46, %c0_47, %c0_48] : memref<2x1x128xf32, #tpu.memory_space<vmem>>, vector<1x1x128xf32>
    %124 = vector.shape_cast %123 : vector<1x1x128xf32> to vector<1x128xf32>
    %cst_49 = arith.constant dense<0.000000e+00> : vector<16xf32>
    %125 = vector.multi_reduction <add>, %120, %cst_49 [1] : vector<16x128xf32> to vector<16xf32>
    %126 = vector.shape_cast %125 : vector<16xf32> to vector<16x1xf32>
    %cst_50 = arith.constant 1.280000e+02 : f32
    %127 = vector.broadcast %cst_50 : f32 to vector<16x1xf32>
    %128 = arith.divf %126, %127 : vector<16x1xf32>
    %129 = vector.broadcast %128 : vector<16x1xf32> to vector<16x128xf32>
    %130 = arith.subf %120, %129 : vector<16x128xf32>
    %131 = arith.mulf %130, %130 : vector<16x128xf32>
    %cst_51 = arith.constant dense<0.000000e+00> : vector<16xf32>
    %132 = vector.multi_reduction <add>, %131, %cst_51 [1] : vector<16x128xf32> to vector<16xf32>
    %133 = vector.shape_cast %132 : vector<16xf32> to vector<16x1xf32>
    %cst_52 = arith.constant 1.280000e+02 : f32
    %134 = vector.broadcast %cst_52 : f32 to vector<16x1xf32>
    %135 = arith.divf %133, %134 : vector<16x1xf32>
    %136 = vector.broadcast %128 : vector<16x1xf32> to vector<16x128xf32>
    %137 = arith.subf %120, %136 : vector<16x128xf32>
    %cst_53 = arith.constant 9.99999974E-6 : f32
    %138 = vector.broadcast %cst_53 : f32 to vector<16x1xf32>
    %139 = arith.addf %135, %138 : vector<16x1xf32>
    %140 = math.rsqrt %139 : vector<16x1xf32>
    %141 = vector.broadcast %140 : vector<16x1xf32> to vector<16x128xf32>
    %142 = arith.mulf %137, %141 : vector<16x128xf32>
    %143 = vector.broadcast %122 : vector<1x128xf32> to vector<16x128xf32>
    %144 = arith.mulf %142, %143 : vector<16x128xf32>
    %145 = vector.broadcast %124 : vector<1x128xf32> to vector<16x128xf32>
    %146 = arith.addf %144, %145 : vector<16x128xf32>
    %147 = arith.truncf %146 : vector<16x128xf32> to vector<16x128xbf16>
    %c0_54 = arith.constant 0 : index
    %c0_55 = arith.constant 0 : index
    %c0_56 = arith.constant 0 : index
    %148 = vector.load %arg5[%c0_54, %c0_55, %c0_56] : memref<2x128x256xbf16, #tpu.memory_space<vmem>>, vector<1x128x256xbf16>
    %149 = vector.shape_cast %148 : vector<1x128x256xbf16> to vector<128x256xbf16>
    %cst_57 = arith.constant dense<0.000000e+00> : vector<16x256xf32>
    %150 = tpu.matmul %147, %149, %cst_57 {dimension_numbers = #tpu.dot_dimension_numbers<[1], [0], [0], [1], [0, 0, 1, 1], [], []>} : vector<16x128xbf16>, vector<128x256xbf16>, vector<16x256xf32> -> vector<16x256xf32>
    %c0_58 = arith.constant 0 : index
    %c0_59 = arith.constant 0 : index
    %c0_60 = arith.constant 0 : index
    %151 = vector.load %arg6[%c0_58, %c0_59, %c0_60] : memref<2x1x256xf32, #tpu.memory_space<vmem>>, vector<1x1x256xf32>
    %152 = vector.shape_cast %151 : vector<1x1x256xf32> to vector<1x256xf32>
    %153 = vector.broadcast %152 : vector<1x256xf32> to vector<16x256xf32>
    %154 = arith.addf %150, %153 : vector<16x256xf32>
    %cst_61 = arith.constant 0.000000e+00 : f32
    %155 = vector.broadcast %cst_61 : f32 to vector<16x256xf32>
    %156 = arith.maximumf %154, %155 : vector<16x256xf32>
    %157 = arith.truncf %156 : vector<16x256xf32> to vector<16x256xbf16>
    %c0_62 = arith.constant 0 : index
    %c0_63 = arith.constant 0 : index
    %c0_64 = arith.constant 0 : index
    %158 = vector.load %arg7[%c0_62, %c0_63, %c0_64] : memref<2x256x128xbf16, #tpu.memory_space<vmem>>, vector<1x256x128xbf16>
    %159 = vector.shape_cast %158 : vector<1x256x128xbf16> to vector<256x128xbf16>
    %cst_65 = arith.constant dense<0.000000e+00> : vector<16x128xf32>
    %160 = tpu.matmul %157, %159, %cst_65 {dimension_numbers = #tpu.dot_dimension_numbers<[1], [0], [0], [1], [0, 0, 1, 1], [], []>} : vector<16x256xbf16>, vector<256x128xbf16>, vector<16x128xf32> -> vector<16x128xf32>
    %c0_66 = arith.constant 0 : index
    %c0_67 = arith.constant 0 : index
    %c0_68 = arith.constant 0 : index
    %161 = vector.load %arg8[%c0_66, %c0_67, %c0_68] : memref<2x1x128xf32, #tpu.memory_space<vmem>>, vector<1x1x128xf32>
    %162 = vector.shape_cast %161 : vector<1x1x128xf32> to vector<1x128xf32>
    %163 = vector.broadcast %162 : vector<1x128xf32> to vector<16x128xf32>
    %164 = arith.addf %160, %163 : vector<16x128xf32>
    %165 = arith.addf %146, %164 : vector<16x128xf32>
    %c0_69 = arith.constant 0 : index
    %c0_70 = arith.constant 0 : index
    %c0_71 = arith.constant 0 : index
    %166 = vector.load %arg11[%c0_69, %c0_70, %c0_71] : memref<2x1x128xf32, #tpu.memory_space<vmem>>, vector<1x1x128xf32>
    %167 = vector.shape_cast %166 : vector<1x1x128xf32> to vector<1x128xf32>
    %c0_72 = arith.constant 0 : index
    %c0_73 = arith.constant 0 : index
    %c0_74 = arith.constant 0 : index
    %168 = vector.load %arg12[%c0_72, %c0_73, %c0_74] : memref<2x1x128xf32, #tpu.memory_space<vmem>>, vector<1x1x128xf32>
    %169 = vector.shape_cast %168 : vector<1x1x128xf32> to vector<1x128xf32>
    %cst_75 = arith.constant dense<0.000000e+00> : vector<16xf32>
    %170 = vector.multi_reduction <add>, %165, %cst_75 [1] : vector<16x128xf32> to vector<16xf32>
    %171 = vector.shape_cast %170 : vector<16xf32> to vector<16x1xf32>
    %cst_76 = arith.constant 1.280000e+02 : f32
    %172 = vector.broadcast %cst_76 : f32 to vector<16x1xf32>
    %173 = arith.divf %171, %172 : vector<16x1xf32>
    %174 = vector.broadcast %173 : vector<16x1xf32> to vector<16x128xf32>
    %175 = arith.subf %165, %174 : vector<16x128xf32>
    %176 = arith.mulf %175, %175 : vector<16x128xf32>
    %cst_77 = arith.constant dense<0.000000e+00> : vector<16xf32>
    %177 = vector.multi_reduction <add>, %176, %cst_77 [1] : vector<16x128xf32> to vector<16xf32>
    %178 = vector.shape_cast %177 : vector<16xf32> to vector<16x1xf32>
    %cst_78 = arith.constant 1.280000e+02 : f32
    %179 = vector.broadcast %cst_78 : f32 to vector<16x1xf32>
    %180 = arith.divf %178, %179 : vector<16x1xf32>
    %181 = vector.broadcast %173 : vector<16x1xf32> to vector<16x128xf32>
    %182 = arith.subf %165, %181 : vector<16x128xf32>
    %cst_79 = arith.constant 9.99999974E-6 : f32
    %183 = vector.broadcast %cst_79 : f32 to vector<16x1xf32>
    %184 = arith.addf %180, %183 : vector<16x1xf32>
    %185 = math.rsqrt %184 : vector<16x1xf32>
    %186 = vector.broadcast %185 : vector<16x1xf32> to vector<16x128xf32>
    %187 = arith.mulf %182, %186 : vector<16x128xf32>
    %188 = vector.broadcast %167 : vector<1x128xf32> to vector<16x128xf32>
    %189 = arith.mulf %187, %188 : vector<16x128xf32>
    %190 = vector.broadcast %169 : vector<1x128xf32> to vector<16x128xf32>
    %191 = arith.addf %189, %190 : vector<16x128xf32>
    %192 = arith.truncf %191 : vector<16x128xf32> to vector<16x128xbf16>
    %c1 = arith.constant 1 : index
    %c0_80 = arith.constant 0 : index
    %c0_81 = arith.constant 0 : index
    %193 = vector.load %arg1[%c1, %c0_80, %c0_81] : memref<2x128x384xbf16, #tpu.memory_space<vmem>>, vector<1x128x384xbf16>
    %194 = vector.shape_cast %193 : vector<1x128x384xbf16> to vector<128x384xbf16>
    %cst_82 = arith.constant dense<0.000000e+00> : vector<16x384xf32>
    %195 = tpu.matmul %192, %194, %cst_82 {dimension_numbers = #tpu.dot_dimension_numbers<[1], [0], [0], [1], [0, 0, 1, 1], [], []>} : vector<16x128xbf16>, vector<128x384xbf16>, vector<16x384xf32> -> vector<16x384xf32>
    %c1_83 = arith.constant 1 : index
    %c0_84 = arith.constant 0 : index
    %c0_85 = arith.constant 0 : index
    %196 = vector.load %arg2[%c1_83, %c0_84, %c0_85] : memref<2x1x384xf32, #tpu.memory_space<vmem>>, vector<1x1x384xf32>
    %197 = vector.shape_cast %196 : vector<1x1x384xf32> to vector<1x384xf32>
    %198 = vector.broadcast %197 : vector<1x384xf32> to vector<16x384xf32>
    %199 = arith.addf %195, %198 : vector<16x384xf32>
    %200 = vector.extract_strided_slice %199 {offsets = [0, 0], sizes = [16, 32], strides = [1, 1]} : vector<16x384xf32> to vector<16x32xf32>
    %201 = vector.extract_strided_slice %199 {offsets = [0, 128], sizes = [16, 32], strides = [1, 1]} : vector<16x384xf32> to vector<16x32xf32>
    %202 = vector.extract_strided_slice %199 {offsets = [0, 256], sizes = [16, 32], strides = [1, 1]} : vector<16x384xf32> to vector<16x32xf32>
    %203 = arith.truncf %200 : vector<16x32xf32> to vector<16x32xbf16>
    %204 = arith.truncf %201 : vector<16x32xf32> to vector<16x32xbf16>
    "tpu.trace_start"() <{level = 10 : i32, message = "md,nd->mn"}> : () -> ()
    %cst_86 = arith.constant dense<0.000000e+00> : vector<16x16xf32>
    %205 = tpu.matmul %203, %204, %cst_86 {dimension_numbers = #tpu.dot_dimension_numbers<[1], [1], [0], [0], [0, 0, 1, 0], [], []>} : vector<16x32xbf16>, vector<16x32xbf16>, vector<16x16xf32> -> vector<16x16xf32>
    "tpu.trace_stop"() : () -> ()
    %206 = arith.addf %205, %18 : vector<16x16xf32>
    %cst_87 = arith.constant dense<0xFF800000> : vector<16xf32>
    %207 = vector.multi_reduction <maximumf>, %206, %cst_87 [1] : vector<16x16xf32> to vector<16xf32>
    %208 = vector.shape_cast %207 : vector<16xf32> to vector<16x1xf32>
    %209 = vector.broadcast %208 : vector<16x1xf32> to vector<16x16xf32>
    %210 = arith.subf %206, %209 : vector<16x16xf32>
    %211 = math.exp %210 : vector<16x16xf32>
    %cst_88 = arith.constant dense<0.000000e+00> : vector<16xf32>
    %212 = vector.multi_reduction <add>, %211, %cst_88 [1] : vector<16x16xf32> to vector<16xf32>
    %213 = vector.shape_cast %212 : vector<16xf32> to vector<16x1xf32>
    %214 = tpu.reciprocal %213 {approx = true} : vector<16x1xf32> -> vector<16x1xf32>
    %215 = vector.broadcast %214 : vector<16x1xf32> to vector<16x16xf32>
    %216 = arith.mulf %211, %215 : vector<16x16xf32>
    %217 = arith.truncf %216 : vector<16x16xf32> to vector<16x16xbf16>
    %218 = arith.truncf %202 : vector<16x32xf32> to vector<16x32xbf16>
    %cst_89 = arith.constant dense<0.000000e+00> : vector<16x32xf32>
    %219 = tpu.matmul %217, %218, %cst_89 {dimension_numbers = #tpu.dot_dimension_numbers<[1], [0], [0], [1], [0, 0, 1, 1], [], []>} : vector<16x16xbf16>, vector<16x32xbf16>, vector<16x32xf32> -> vector<16x32xf32>
    %c0_90 = arith.constant 0 : index
    %c0_91 = arith.constant 0 : index
    %220 = vector.load %arg16[%c0_90, %c0_91] : memref<16x128xf32, #tpu.memory_space<vmem>>, vector<16x32xf32>
    tpu.vector_store %arg16[%c0_90, %c0_91], %219 {strides = array<i32>} : memref<16x128xf32, #tpu.memory_space<vmem>>, vector<16x32xf32>,
    %221 = vector.extract_strided_slice %199 {offsets = [0, 32], sizes = [16, 32], strides = [1, 1]} : vector<16x384xf32> to vector<16x32xf32>
    %222 = vector.extract_strided_slice %199 {offsets = [0, 160], sizes = [16, 32], strides = [1, 1]} : vector<16x384xf32> to vector<16x32xf32>
    %223 = vector.extract_strided_slice %199 {offsets = [0, 288], sizes = [16, 32], strides = [1, 1]} : vector<16x384xf32> to vector<16x32xf32>
    %224 = arith.truncf %221 : vector<16x32xf32> to vector<16x32xbf16>
    %225 = arith.truncf %222 : vector<16x32xf32> to vector<16x32xbf16>
    "tpu.trace_start"() <{level = 10 : i32, message = "md,nd->mn"}> : () -> ()
    %cst_92 = arith.constant dense<0.000000e+00> : vector<16x16xf32>
    %226 = tpu.matmul %224, %225, %cst_92 {dimension_numbers = #tpu.dot_dimension_numbers<[1], [1], [0], [0], [0, 0, 1, 0], [], []>} : vector<16x32xbf16>, vector<16x32xbf16>, vector<16x16xf32> -> vector<16x16xf32>
    "tpu.trace_stop"() : () -> ()
    %227 = arith.addf %226, %18 : vector<16x16xf32>
    %cst_93 = arith.constant dense<0xFF800000> : vector<16xf32>
    %228 = vector.multi_reduction <maximumf>, %227, %cst_93 [1] : vector<16x16xf32> to vector<16xf32>
    %229 = vector.shape_cast %228 : vector<16xf32> to vector<16x1xf32>
    %230 = vector.broadcast %229 : vector<16x1xf32> to vector<16x16xf32>
    %231 = arith.subf %227, %230 : vector<16x16xf32>
    %232 = math.exp %231 : vector<16x16xf32>
    %cst_94 = arith.constant dense<0.000000e+00> : vector<16xf32>
    %233 = vector.multi_reduction <add>, %232, %cst_94 [1] : vector<16x16xf32> to vector<16xf32>
    %234 = vector.shape_cast %233 : vector<16xf32> to vector<16x1xf32>
    %235 = tpu.reciprocal %234 {approx = true} : vector<16x1xf32> -> vector<16x1xf32>
    %236 = vector.broadcast %235 : vector<16x1xf32> to vector<16x16xf32>
    %237 = arith.mulf %232, %236 : vector<16x16xf32>
    %238 = arith.truncf %237 : vector<16x16xf32> to vector<16x16xbf16>
    %239 = arith.truncf %223 : vector<16x32xf32> to vector<16x32xbf16>
    %cst_95 = arith.constant dense<0.000000e+00> : vector<16x32xf32>
    %240 = tpu.matmul %238, %239, %cst_95 {dimension_numbers = #tpu.dot_dimension_numbers<[1], [0], [0], [1], [0, 0, 1, 1], [], []>} : vector<16x16xbf16>, vector<16x32xbf16>, vector<16x32xf32> -> vector<16x32xf32>
    %c0_96 = arith.constant 0 : index
    %c32_97 = arith.constant 32 : index
    %241 = vector.load %arg16[%c0_96, %c32_97] : memref<16x128xf32, #tpu.memory_space<vmem>>, vector<16x32xf32>
    tpu.vector_store %arg16[%c0_96, %c32_97], %240 {strides = array<i32>} : memref<16x128xf32, #tpu.memory_space<vmem>>, vector<16x32xf32>,
    %242 = vector.extract_strided_slice %199 {offsets = [0, 64], sizes = [16, 32], strides = [1, 1]} : vector<16x384xf32> to vector<16x32xf32>
    %243 = vector.extract_strided_slice %199 {offsets = [0, 192], sizes = [16, 32], strides = [1, 1]} : vector<16x384xf32> to vector<16x32xf32>
    %244 = vector.extract_strided_slice %199 {offsets = [0, 320], sizes = [16, 32], strides = [1, 1]} : vector<16x384xf32> to vector<16x32xf32>
    %245 = arith.truncf %242 : vector<16x32xf32> to vector<16x32xbf16>
    %246 = arith.truncf %243 : vector<16x32xf32> to vector<16x32xbf16>
    "tpu.trace_start"() <{level = 10 : i32, message = "md,nd->mn"}> : () -> ()
    %cst_98 = arith.constant dense<0.000000e+00> : vector<16x16xf32>
    %247 = tpu.matmul %245, %246, %cst_98 {dimension_numbers = #tpu.dot_dimension_numbers<[1], [1], [0], [0], [0, 0, 1, 0], [], []>} : vector<16x32xbf16>, vector<16x32xbf16>, vector<16x16xf32> -> vector<16x16xf32>
    "tpu.trace_stop"() : () -> ()
    %248 = arith.addf %247, %18 : vector<16x16xf32>
    %cst_99 = arith.constant dense<0xFF800000> : vector<16xf32>
    %249 = vector.multi_reduction <maximumf>, %248, %cst_99 [1] : vector<16x16xf32> to vector<16xf32>
    %250 = vector.shape_cast %249 : vector<16xf32> to vector<16x1xf32>
    %251 = vector.broadcast %250 : vector<16x1xf32> to vector<16x16xf32>
    %252 = arith.subf %248, %251 : vector<16x16xf32>
    %253 = math.exp %252 : vector<16x16xf32>
    %cst_100 = arith.constant dense<0.000000e+00> : vector<16xf32>
    %254 = vector.multi_reduction <add>, %253, %cst_100 [1] : vector<16x16xf32> to vector<16xf32>
    %255 = vector.shape_cast %254 : vector<16xf32> to vector<16x1xf32>
    %256 = tpu.reciprocal %255 {approx = true} : vector<16x1xf32> -> vector<16x1xf32>
    %257 = vector.broadcast %256 : vector<16x1xf32> to vector<16x16xf32>
    %258 = arith.mulf %253, %257 : vector<16x16xf32>
    %259 = arith.truncf %258 : vector<16x16xf32> to vector<16x16xbf16>
    %260 = arith.truncf %244 : vector<16x32xf32> to vector<16x32xbf16>
    %cst_101 = arith.constant dense<0.000000e+00> : vector<16x32xf32>
    %261 = tpu.matmul %259, %260, %cst_101 {dimension_numbers = #tpu.dot_dimension_numbers<[1], [0], [0], [1], [0, 0, 1, 1], [], []>} : vector<16x16xbf16>, vector<16x32xbf16>, vector<16x32xf32> -> vector<16x32xf32>
    %c0_102 = arith.constant 0 : index
    %c64_103 = arith.constant 64 : index
    %262 = vector.load %arg16[%c0_102, %c64_103] : memref<16x128xf32, #tpu.memory_space<vmem>>, vector<16x32xf32>
    tpu.vector_store %arg16[%c0_102, %c64_103], %261 {strides = array<i32>} : memref<16x128xf32, #tpu.memory_space<vmem>>, vector<16x32xf32>,
    %263 = vector.extract_strided_slice %199 {offsets = [0, 96], sizes = [16, 32], strides = [1, 1]} : vector<16x384xf32> to vector<16x32xf32>
    %264 = vector.extract_strided_slice %199 {offsets = [0, 224], sizes = [16, 32], strides = [1, 1]} : vector<16x384xf32> to vector<16x32xf32>
    %265 = vector.extract_strided_slice %199 {offsets = [0, 352], sizes = [16, 32], strides = [1, 1]} : vector<16x384xf32> to vector<16x32xf32>
    %266 = arith.truncf %263 : vector<16x32xf32> to vector<16x32xbf16>
    %267 = arith.truncf %264 : vector<16x32xf32> to vector<16x32xbf16>
    "tpu.trace_start"() <{level = 10 : i32, message = "md,nd->mn"}> : () -> ()
    %cst_104 = arith.constant dense<0.000000e+00> : vector<16x16xf32>
    %268 = tpu.matmul %266, %267, %cst_104 {dimension_numbers = #tpu.dot_dimension_numbers<[1], [1], [0], [0], [0, 0, 1, 0], [], []>} : vector<16x32xbf16>, vector<16x32xbf16>, vector<16x16xf32> -> vector<16x16xf32>
    "tpu.trace_stop"() : () -> ()
    %269 = arith.addf %268, %18 : vector<16x16xf32>
    %cst_105 = arith.constant dense<0xFF800000> : vector<16xf32>
    %270 = vector.multi_reduction <maximumf>, %269, %cst_105 [1] : vector<16x16xf32> to vector<16xf32>
    %271 = vector.shape_cast %270 : vector<16xf32> to vector<16x1xf32>
    %272 = vector.broadcast %271 : vector<16x1xf32> to vector<16x16xf32>
    %273 = arith.subf %269, %272 : vector<16x16xf32>
    %274 = math.exp %273 : vector<16x16xf32>
    %cst_106 = arith.constant dense<0.000000e+00> : vector<16xf32>
    %275 = vector.multi_reduction <add>, %274, %cst_106 [1] : vector<16x16xf32> to vector<16xf32>
    %276 = vector.shape_cast %275 : vector<16xf32> to vector<16x1xf32>
    %277 = tpu.reciprocal %276 {approx = true} : vector<16x1xf32> -> vector<16x1xf32>
    %278 = vector.broadcast %277 : vector<16x1xf32> to vector<16x16xf32>
    %279 = arith.mulf %274, %278 : vector<16x16xf32>
    %280 = arith.truncf %279 : vector<16x16xf32> to vector<16x16xbf16>
    %281 = arith.truncf %265 : vector<16x32xf32> to vector<16x32xbf16>
    %cst_107 = arith.constant dense<0.000000e+00> : vector<16x32xf32>
    %282 = tpu.matmul %280, %281, %cst_107 {dimension_numbers = #tpu.dot_dimension_numbers<[1], [0], [0], [1], [0, 0, 1, 1], [], []>} : vector<16x16xbf16>, vector<16x32xbf16>, vector<16x32xf32> -> vector<16x32xf32>
    %c0_108 = arith.constant 0 : index
    %c96_109 = arith.constant 96 : index
    %283 = vector.load %arg16[%c0_108, %c96_109] : memref<16x128xf32, #tpu.memory_space<vmem>>, vector<16x32xf32>
    tpu.vector_store %arg16[%c0_108, %c96_109], %282 {strides = array<i32>} : memref<16x128xf32, #tpu.memory_space<vmem>>, vector<16x32xf32>,
    %c0_110 = arith.constant 0 : index
    %c0_111 = arith.constant 0 : index
    %284 = vector.load %arg16[%c0_110, %c0_111] : memref<16x128xf32, #tpu.memory_space<vmem>>, vector<16x128xf32>
    %285 = arith.truncf %284 : vector<16x128xf32> to vector<16x128xbf16>
    %c1_112 = arith.constant 1 : index
    %c0_113 = arith.constant 0 : index
    %c0_114 = arith.constant 0 : index
    %286 = vector.load %arg3[%c1_112, %c0_113, %c0_114] : memref<2x128x128xbf16, #tpu.memory_space<vmem>>, vector<1x128x128xbf16>
    %287 = vector.shape_cast %286 : vector<1x128x128xbf16> to vector<128x128xbf16>
    %cst_115 = arith.constant dense<0.000000e+00> : vector<16x128xf32>
    %288 = tpu.matmul %285, %287, %cst_115 {dimension_numbers = #tpu.dot_dimension_numbers<[1], [0], [0], [1], [0, 0, 1, 1], [], []>} : vector<16x128xbf16>, vector<128x128xbf16>, vector<16x128xf32> -> vector<16x128xf32>
    %c1_116 = arith.constant 1 : index
    %c0_117 = arith.constant 0 : index
    %c0_118 = arith.constant 0 : index
    %289 = vector.load %arg4[%c1_116, %c0_117, %c0_118] : memref<2x1x128xf32, #tpu.memory_space<vmem>>, vector<1x1x128xf32>
    %290 = vector.shape_cast %289 : vector<1x1x128xf32> to vector<1x128xf32>
    %291 = vector.broadcast %290 : vector<1x128xf32> to vector<16x128xf32>
    %292 = arith.addf %288, %291 : vector<16x128xf32>
    %293 = arith.addf %191, %292 : vector<16x128xf32>
    %c1_119 = arith.constant 1 : index
    %c0_120 = arith.constant 0 : index
    %c0_121 = arith.constant 0 : index
    %294 = vector.load %arg9[%c1_119, %c0_120, %c0_121] : memref<2x1x128xf32, #tpu.memory_space<vmem>>, vector<1x1x128xf32>
    %295 = vector.shape_cast %294 : vector<1x1x128xf32> to vector<1x128xf32>
    %c1_122 = arith.constant 1 : index
    %c0_123 = arith.constant 0 : index
    %c0_124 = arith.constant 0 : index
    %296 = vector.load %arg10[%c1_122, %c0_123, %c0_124] : memref<2x1x128xf32, #tpu.memory_space<vmem>>, vector<1x1x128xf32>
    %297 = vector.shape_cast %296 : vector<1x1x128xf32> to vector<1x128xf32>
    %cst_125 = arith.constant dense<0.000000e+00> : vector<16xf32>
    %298 = vector.multi_reduction <add>, %293, %cst_125 [1] : vector<16x128xf32> to vector<16xf32>
    %299 = vector.shape_cast %298 : vector<16xf32> to vector<16x1xf32>
    %cst_126 = arith.constant 1.280000e+02 : f32
    %300 = vector.broadcast %cst_126 : f32 to vector<16x1xf32>
    %301 = arith.divf %299, %300 : vector<16x1xf32>
    %302 = vector.broadcast %301 : vector<16x1xf32> to vector<16x128xf32>
    %303 = arith.subf %293, %302 : vector<16x128xf32>
    %304 = arith.mulf %303, %303 : vector<16x128xf32>
    %cst_127 = arith.constant dense<0.000000e+00> : vector<16xf32>
    %305 = vector.multi_reduction <add>, %304, %cst_127 [1] : vector<16x128xf32> to vector<16xf32>
    %306 = vector.shape_cast %305 : vector<16xf32> to vector<16x1xf32>
    %cst_128 = arith.constant 1.280000e+02 : f32
    %307 = vector.broadcast %cst_128 : f32 to vector<16x1xf32>
    %308 = arith.divf %306, %307 : vector<16x1xf32>
    %309 = vector.broadcast %301 : vector<16x1xf32> to vector<16x128xf32>
    %310 = arith.subf %293, %309 : vector<16x128xf32>
    %cst_129 = arith.constant 9.99999974E-6 : f32
    %311 = vector.broadcast %cst_129 : f32 to vector<16x1xf32>
    %312 = arith.addf %308, %311 : vector<16x1xf32>
    %313 = math.rsqrt %312 : vector<16x1xf32>
    %314 = vector.broadcast %313 : vector<16x1xf32> to vector<16x128xf32>
    %315 = arith.mulf %310, %314 : vector<16x128xf32>
    %316 = vector.broadcast %295 : vector<1x128xf32> to vector<16x128xf32>
    %317 = arith.mulf %315, %316 : vector<16x128xf32>
    %318 = vector.broadcast %297 : vector<1x128xf32> to vector<16x128xf32>
    %319 = arith.addf %317, %318 : vector<16x128xf32>
    %320 = arith.truncf %319 : vector<16x128xf32> to vector<16x128xbf16>
    %c1_130 = arith.constant 1 : index
    %c0_131 = arith.constant 0 : index
    %c0_132 = arith.constant 0 : index
    %321 = vector.load %arg5[%c1_130, %c0_131, %c0_132] : memref<2x128x256xbf16, #tpu.memory_space<vmem>>, vector<1x128x256xbf16>
    %322 = vector.shape_cast %321 : vector<1x128x256xbf16> to vector<128x256xbf16>
    %cst_133 = arith.constant dense<0.000000e+00> : vector<16x256xf32>
    %323 = tpu.matmul %320, %322, %cst_133 {dimension_numbers = #tpu.dot_dimension_numbers<[1], [0], [0], [1], [0, 0, 1, 1], [], []>} : vector<16x128xbf16>, vector<128x256xbf16>, vector<16x256xf32> -> vector<16x256xf32>
    %c1_134 = arith.constant 1 : index
    %c0_135 = arith.constant 0 : index
    %c0_136 = arith.constant 0 : index
    %324 = vector.load %arg6[%c1_134, %c0_135, %c0_136] : memref<2x1x256xf32, #tpu.memory_space<vmem>>, vector<1x1x256xf32>
    %325 = vector.shape_cast %324 : vector<1x1x256xf32> to vector<1x256xf32>
    %326 = vector.broadcast %325 : vector<1x256xf32> to vector<16x256xf32>
    %327 = arith.addf %323, %326 : vector<16x256xf32>
    %cst_137 = arith.constant 0.000000e+00 : f32
    %328 = vector.broadcast %cst_137 : f32 to vector<16x256xf32>
    %329 = arith.maximumf %327, %328 : vector<16x256xf32>
    %330 = arith.truncf %329 : vector<16x256xf32> to vector<16x256xbf16>
    %c1_138 = arith.constant 1 : index
    %c0_139 = arith.constant 0 : index
    %c0_140 = arith.constant 0 : index
    %331 = vector.load %arg7[%c1_138, %c0_139, %c0_140] : memref<2x256x128xbf16, #tpu.memory_space<vmem>>, vector<1x256x128xbf16>
    %332 = vector.shape_cast %331 : vector<1x256x128xbf16> to vector<256x128xbf16>
    %cst_141 = arith.constant dense<0.000000e+00> : vector<16x128xf32>
    %333 = tpu.matmul %330, %332, %cst_141 {dimension_numbers = #tpu.dot_dimension_numbers<[1], [0], [0], [1], [0, 0, 1, 1], [], []>} : vector<16x256xbf16>, vector<256x128xbf16>, vector<16x128xf32> -> vector<16x128xf32>
    %c1_142 = arith.constant 1 : index
    %c0_143 = arith.constant 0 : index
    %c0_144 = arith.constant 0 : index
    %334 = vector.load %arg8[%c1_142, %c0_143, %c0_144] : memref<2x1x128xf32, #tpu.memory_space<vmem>>, vector<1x1x128xf32>
    %335 = vector.shape_cast %334 : vector<1x1x128xf32> to vector<1x128xf32>
    %336 = vector.broadcast %335 : vector<1x128xf32> to vector<16x128xf32>
    %337 = arith.addf %333, %336 : vector<16x128xf32>
    %338 = arith.addf %319, %337 : vector<16x128xf32>
    %c1_145 = arith.constant 1 : index
    %c0_146 = arith.constant 0 : index
    %c0_147 = arith.constant 0 : index
    %339 = vector.load %arg11[%c1_145, %c0_146, %c0_147] : memref<2x1x128xf32, #tpu.memory_space<vmem>>, vector<1x1x128xf32>
    %340 = vector.shape_cast %339 : vector<1x1x128xf32> to vector<1x128xf32>
    %c1_148 = arith.constant 1 : index
    %c0_149 = arith.constant 0 : index
    %c0_150 = arith.constant 0 : index
    %341 = vector.load %arg12[%c1_148, %c0_149, %c0_150] : memref<2x1x128xf32, #tpu.memory_space<vmem>>, vector<1x1x128xf32>
    %342 = vector.shape_cast %341 : vector<1x1x128xf32> to vector<1x128xf32>
    %cst_151 = arith.constant dense<0.000000e+00> : vector<16xf32>
    %343 = vector.multi_reduction <add>, %338, %cst_151 [1] : vector<16x128xf32> to vector<16xf32>
    %344 = vector.shape_cast %343 : vector<16xf32> to vector<16x1xf32>
    %cst_152 = arith.constant 1.280000e+02 : f32
    %345 = vector.broadcast %cst_152 : f32 to vector<16x1xf32>
    %346 = arith.divf %344, %345 : vector<16x1xf32>
    %347 = vector.broadcast %346 : vector<16x1xf32> to vector<16x128xf32>
    %348 = arith.subf %338, %347 : vector<16x128xf32>
    %349 = arith.mulf %348, %348 : vector<16x128xf32>
    %cst_153 = arith.constant dense<0.000000e+00> : vector<16xf32>
    %350 = vector.multi_reduction <add>, %349, %cst_153 [1] : vector<16x128xf32> to vector<16xf32>
    %351 = vector.shape_cast %350 : vector<16xf32> to vector<16x1xf32>
    %cst_154 = arith.constant 1.280000e+02 : f32
    %352 = vector.broadcast %cst_154 : f32 to vector<16x1xf32>
    %353 = arith.divf %351, %352 : vector<16x1xf32>
    %354 = vector.broadcast %346 : vector<16x1xf32> to vector<16x128xf32>
    %355 = arith.subf %338, %354 : vector<16x128xf32>
    %cst_155 = arith.constant 9.99999974E-6 : f32
    %356 = vector.broadcast %cst_155 : f32 to vector<16x1xf32>
    %357 = arith.addf %353, %356 : vector<16x1xf32>
    %358 = math.rsqrt %357 : vector<16x1xf32>
    %359 = vector.broadcast %358 : vector<16x1xf32> to vector<16x128xf32>
    %360 = arith.mulf %355, %359 : vector<16x128xf32>
    %361 = vector.broadcast %340 : vector<1x128xf32> to vector<16x128xf32>
    %362 = arith.mulf %360, %361 : vector<16x128xf32>
    %363 = vector.broadcast %342 : vector<1x128xf32> to vector<16x128xf32>
    %364 = arith.addf %362, %363 : vector<16x128xf32>
    %365 = vector.shape_cast %364 : vector<16x128xf32> to vector<2x8x128xf32>
    %366 = vector.extract_strided_slice %365 {offsets = [0, 0, 0], sizes = [2, 1, 128], strides = [1, 1, 1]} : vector<2x8x128xf32> to vector<2x1x128xf32>
    %367 = vector.shape_cast %366 : vector<2x1x128xf32> to vector<2x128xf32>
    %368 = arith.truncf %367 : vector<2x128xf32> to vector<2x128xbf16>
    %c0_156 = arith.constant 0 : index
    %c0_157 = arith.constant 0 : index
    %369 = vector.load %arg13[%c0_156, %c0_157] : memref<128x128xbf16, #tpu.memory_space<vmem>>, vector<128x128xbf16>
    %cst_158 = arith.constant dense<0.000000e+00> : vector<2x128xf32>
    %370 = tpu.matmul %368, %369, %cst_158 {dimension_numbers = #tpu.dot_dimension_numbers<[1], [0], [0], [1], [0, 0, 1, 1], [], []>} : vector<2x128xbf16>, vector<128x128xbf16>, vector<2x128xf32> -> vector<2x128xf32>
    %c0_159 = arith.constant 0 : index
    %c0_160 = arith.constant 0 : index
    %371 = vector.load %arg14[%c0_159, %c0_160] : memref<1x128xf32, #tpu.memory_space<vmem>>, vector<1x128xf32>
    %372 = vector.broadcast %371 : vector<1x128xf32> to vector<2x128xf32>
    %373 = arith.addf %370, %372 : vector<2x128xf32>
    %c0_161 = arith.constant 0 : index
    %c0_162 = arith.constant 0 : index
    %374 = vector.load %arg15[%c0_161, %c0_162] : memref<2x128xf32, #tpu.memory_space<vmem>>, vector<2x128xf32>
    tpu.vector_store %arg15[%c0_161, %c0_162], %373 {strides = array<i32>} : memref<2x128xf32, #tpu.memory_space<vmem>>, vector<2x128xf32>,
    return
  }
}

</mosaic_0001>

<bundles_post_ra>
// kernel: small_transformer_forward.1
= control target key start
LH: loop header
LB: loop body
LE: loop exit
PB: predicated region body
PF: predicated region fallthrough
CT: control target
= control target key end

     0   :  { %20 = vsyncpa [#allocation4], 0  ;;  %s3627_s0 = inlined_call_operand.vmem [shape: f32[16,128], index: 0, kind: input, shape index: {}]   ;;  %s3628_s1 = inlined_call_operand.hbm [shape: bf16[2,128,384], index: 1, kind: input, shape index: {}]   ;;  %s3629_s2 = inlined_call_operand.vmem [shape: f32[2,1,384], index: 2, kind: input, shape index: {}]   ;;  %s3630_s3 = inlined_call_operand.vmem [shape: bf16[2,128,128], index: 3, kind: input, shape index: {}]   ;;  %s3631_s4 = inlined_call_operand.vmem [shape: f32[2,1,128], index: 4, kind: input, shape index: {}]   ;;  %s3632_s5 = inlined_call_operand.hbm [shape: bf16[2,128,256], index: 5, kind: input, shape index: {}]   ;;  %s3633_s6 = inlined_call_operand.vmem [shape: f32[2,1,256], index: 6, kind: input, shape index: {}]   ;;  %s3634_s7 = inlined_call_operand.hbm [shape: bf16[2,256,128], index: 7, kind: input, shape index: {}]   ;;  %s3635_s8 = inlined_call_operand.vmem [shape: f32[2,1,128], index: 8, kind: input, shape index: {}]   ;;  %s3636_s9 = inlined_call_operand.vmem [shape: f32[2,1,128], index: 9, kind: input, shape index: {}]   ;;  %s3637_s10 = inlined_call_operand.vmem [shape: f32[2,1,128], index: 10, kind: input, shape index: {}]   ;;  %s3638_s11 = inlined_call_operand.vmem [shape: f32[2,1,128], index: 11, kind: input, shape index: {}]   ;;  %s3639_s12 = inlined_call_operand.vmem [shape: f32[2,1,128], index: 12, kind: input, shape index: {}]   ;;  %s3640_s13 = inlined_call_operand.vmem [shape: bf16[128,128], index: 13, kind: input, shape index: {}]   ;;  %s3641_s14 = inlined_call_operand.vmem [shape: f32[1,128], index: 14, kind: input, shape index: {}]   ;;  %s3642_s15 = inlined_call_operand.hbm [shape: f32[2,128], index: 15, kind: output, shape index: {}]  }
   0x1   :  { %21 = vsyncpa [#allocation7], 0  ;;  %s48_s20 = sshll.u32 %s3632_s5, 4  ;;  %s49_s20 = int_to_ptr.hbm [resolvable:$true] %s48_s20 }
   0x2   :  { %22 = vsyncpa [#allocation5], 0  ;;  %s3188_s21 = smov [#allocation6]   ;;  %s29_s25 = sshll.u32 %s3628_s1, 4  ;;  %s30_s25 = int_to_ptr.hbm [resolvable:$true] %s29_s25 }
   0x3   :  { %s50_s22 = sshll.u32 %s3188_s21, 4  ;;  %s3189_s26 = smov 128   ;;  %s51_s22 = int_to_ptr.vmem [resolvable:$true] %s50_s22 }
   0x4   :  { %s3190_s27 = smov 8   ;;  %s3191_s28 = smov [#allocation3]  }
   0x5   :  { %56 = dma.hbm_to_vmem [thread:$0]  %s49_s20, 4096, %s51_s22, [#allocation7], %s3189_s26, %s3189_s26, %s3190_s27  }
   0x6   :  { %s31_s29 = sshll.u32 %s3191_s28, 4  ;;  %s3192_s30 = smov 192   ;;  %s32_s29 = int_to_ptr.vmem [resolvable:$true] %s31_s29 }
   0x7   :  { %s3193_s16 = smov 12   ;;  %s63_s18 = sshll.u32 %s3634_s7, 4  ;;  %s64_s18 = int_to_ptr.hbm [resolvable:$true] %s63_s18 }
   0x8   :  { %37 = dma.hbm_to_vmem [thread:$0]  %s30_s25, 6144, %s32_s29, [#allocation4], %s3192_s30, %s3192_s30, %s3193_s16  }
   0x9   :  { %s3194_s19 = smov [#allocation8]   ;;  %s3195_s23 = smov 64  }
   0xa   :  { %s65_s21 = sshll.u32 %s3194_s19, 4  ;;  %s3196_s1 = smov 4   ;;  %s66_s21 = int_to_ptr.vmem [resolvable:$true] %s65_s21 }
   0xb   :  { %71 = dma.hbm_to_vmem [thread:$0]  %s64_s18, 4096, %s66_s21, [#allocation7], %s3195_s23, %s3195_s23, %s3196_s1  }
   0xc   :  { %3182 = dma.done.wait [#allocation4], 6144  }
   0xd   :  { %3183 = vsyncadd [#allocation4], 4294961152 }
   0xe   :  { %3184 = dma.done.wait [#allocation7], 8192  }
   0xf   :  { %3185 = vsyncadd [#allocation7], 4294959104  ;;  %v2343_v0 = vld [vmem:[#allocation3 + $0xa8] sm:$0xf]  ;;  %v2863_v1 = vld [vmem:[#allocation3 + $0xb0] sm:$0xf0] }
  0x10   :  { %v2862_v2 = vld [vmem:[#allocation3 + $0xac] sm:$0xf]  ;;  %v2344_v3 = vor.u32 %v2863_v1, %v2343_v0  ;;  %v2345_v4 = vld [vmem:[#allocation3 + $0xb4] sm:$0xf0]  ;;  %v2331_v5 = vld [vmem:[#allocation3 + $0x90] sm:$0xf] }
  0x11   :  { %v2860_v6 = vld [vmem:[#allocation3 + $0x98] sm:$0xf0]  ;;  %v2348_v7 = vor.u32 %v2862_v2, %v2345_v4  ;;  %v2859_v8 = vld [vmem:[#allocation3 + $0x94] sm:$0xf]  ;;  %v2333_v9 = vld [vmem:[#allocation3 + $0x9c] sm:$0xf0] }
  0x12   :  { %291 = vmatpush.bf16.msra.mxu0 %v2344_v3  ;;  %v2332_v10 = vor.u32 %v2860_v6, %v2331_v5  ;;  %v2336_v11 = vor.u32 %v2859_v8, %v2333_v9  ;;  %v2319_v12 = vld [vmem:[#allocation3 + $0x78] sm:$0xf]  ;;  %v2857_v13 = vld [vmem:[#allocation3 + $0x80] sm:$0xf0]  ;;  %v2856_v14 = vld [vmem:[#allocation3 + $0x7c] sm:$0xf] }
  0x13   :  { %305 = vmatpush.bf16.msra.mxu1 %v2348_v7  ;;  %v2321_v15 = vld [vmem:[#allocation3 + $0x84] sm:$0xf0]  ;;  %v2320_v16 = vor.u32 %v2857_v13, %v2319_v12  ;;  %v2307_v18 = vld [vmem:[#allocation3 + $0x60] sm:$0xf]  ;;  %v2854_v19 = vld [vmem:[#allocation3 + $0x68] sm:$0xf0] }
  0x14   :  { %v2324_v17 = vor.u32 %v2856_v14, %v2321_v15  ;;  %v2853_v20 = vld [vmem:[#allocation3 + $0x64] sm:$0xf]  ;;  %v2309_v21 = vld [vmem:[#allocation3 + $0x6c] sm:$0xf0]  ;;  %v2308_v22 = vor.u32 %v2854_v19, %v2307_v18  ;;  %v2295_v23 = vld [vmem:[#allocation3 + $0x48] sm:$0xf] }
  0x15   :  { %v2351_v24 = vld [vmem:[#allocation3 + $0xb0] sm:$0xf]  ;;  %v2864_v25 = vld [vmem:[#allocation3 + $0xb8] sm:$0xf0]  ;;  %v2312_v26 = vor.u32 %v2853_v20, %v2309_v21  ;;  %v2851_v27 = vld [vmem:[#allocation3 + $0x50] sm:$0xf0] }
  0x16   :  { %292 = vmatpush.bf16.msra.mxu0 %v2332_v10  ;;  %v2352_v28 = vor.u32 %v2864_v25, %v2351_v24  ;;  %v2339_v29 = vld [vmem:[#allocation3 + $0x98] sm:$0xf]  ;;  %v2861_v30 = vld [vmem:[#allocation3 + $0xa0] sm:$0xf0]  ;;  %v2850_v31 = vld [vmem:[#allocation3 + $0x4c] sm:$0xf]  ;;  %v2296_v34 = vor.u32 %v2851_v27, %v2295_v23 }
  0x17   :  { %306 = vmatpush.bf16.msra.mxu1 %v2336_v11  ;;  %v2297_v32 = vld [vmem:[#allocation3 + $0x54] sm:$0xf0]  ;;  %v2340_v33 = vor.u32 %v2861_v30, %v2339_v29  ;;  %v2283_v35 = vld [vmem:[#allocation3 + $0x30] sm:$0xf]  ;;  %v2327_v36 = vld [vmem:[#allocation3 + $0x80] sm:$0xf] }
  0x18   :  { %319 = vmatpush.bf16.msra.mxu2 %v2352_v28  ;;  %v2858_v37 = vld [vmem:[#allocation3 + $0x88] sm:$0xf0]  ;;  %v2300_v38 = vor.u32 %v2850_v31, %v2297_v32  ;;  %v2848_v39 = vld [vmem:[#allocation3 + $0x38] sm:$0xf0]  ;;  %v2847_v40 = vld [vmem:[#allocation3 + $0x34] sm:$0xf] }
  0x19   :  { %v2285_v41 = vld [vmem:[#allocation3 + $0x3c] sm:$0xf0]  ;;  %v2315_v42 = vld [vmem:[#allocation3 + $0x68] sm:$0xf]  ;;  %v2855_v43 = vld [vmem:[#allocation3 + $0x70] sm:$0xf0]  ;;  %v2328_v46 = vor.u32 %v2858_v37, %v2327_v36  ;;  %v2284_v47 = vor.u32 %v2848_v39, %v2283_v35 }
  0x1a   :  { %293 = vmatpush.bf16.msra.mxu0 %v2320_v16  ;;  %v2271_v44 = vld [vmem:[#allocation3 + $0x18] sm:$0xf]  ;;  %v2845_v45 = vld [vmem:[#allocation3 + $0x20] sm:$0xf0]  ;;  %v2844_v48 = vld [vmem:[#allocation3 + $0x1c] sm:$0xf]  ;;  %v2288_v49 = vor.u32 %v2847_v40, %v2285_v41  ;;  %v2316_v51 = vor.u32 %v2855_v43, %v2315_v42 }
  0x1b   :  { %307 = vmatpush.bf16.msra.mxu1 %v2324_v17  ;;  %v2273_v50 = vld [vmem:[#allocation3 + $0x24] sm:$0xf0]  ;;  %v2272_v52 = vor.u32 %v2845_v45, %v2271_v44  ;;  %v2303_v53 = vld [vmem:[#allocation3 + $0x50] sm:$0xf]  ;;  %v2852_v54 = vld [vmem:[#allocation3 + $0x58] sm:$0xf0] }
  0x1c   :  { %320 = vmatpush.bf16.msra.mxu2 %v2340_v33  ;;  %v2276_v55 = vor.u32 %v2844_v48, %v2273_v50  ;;  %v2259_v56 = vld [vmem:[#allocation3] sm:$0xf]  ;;  %v2842_v57 = vld [vmem:[#allocation3 + $0x8] sm:$0xf0]  ;;  %v2841_v58 = vld [vmem:[#allocation3 + $0x4] sm:$0xf]  ;;  %v2304_v61 = vor.u32 %v2852_v54, %v2303_v53  ;;  %v101_v33 = vlaneseq }
  0x1d   :  { %v2261_v59 = vld [vmem:[#allocation3 + $0xc] sm:$0xf0]  ;;  %v2260_v62 = vor.u32 %v2842_v57, %v2259_v56  ;;  %v3301_v63 = vld [vmem:[%s3627_s0 + $0x8] sm:$0xff]  ;;  %v2849_v1 = vld [vmem:[#allocation3 + $0x40] sm:$0xf0]  ;;  %vm335_vm0 = vcmask 261120  }
  0x1e   :  { %294 = vmatpush.bf16.msra.mxu0 %v2308_v22  ;;  %v3296_v60 = vld [vmem:[%s3627_s0] sm:$0xff]  ;;  %v2291_v0 = vld [vmem:[#allocation3 + $0x38] sm:$0xf]  ;;  %v2264_v2 = vor.u32 %v2841_v58, %v2261_v59  ;;  %v2279_v5 = vld [vmem:[#allocation3 + $0x20] sm:$0xf]  ;;  %s3197_s26 = smov 96  }
  0x1f   :  { %308 = vmatpush.bf16.msra.mxu1 %v2312_v26  ;;  %v122_v3 = vpack.c.bf16 %v3301_v63, %v3296_v60  ;;  %v2292_v4 = vor.u32 %v2849_v1, %v2291_v0  ;;  %v2846_v6 = vld [vmem:[#allocation3 + $0x28] sm:$0xf0]  ;;  %v2267_v8 = vld [vmem:[#allocation3 + $0x8] sm:$0xf]  ;;  %v2843_v9 = vld [vmem:[#allocation3 + $0x10] sm:$0xf0] }
  0x20   :  { %321 = vmatpush.bf16.msra.mxu2 %v2328_v46  ;;  %v2280_v7 = vor.u32 %v2846_v6, %v2279_v5  ;;  %v2268_v10 = vor.u32 %v2843_v9, %v2267_v8  ;;  %v155_v12 = vld [vmem:[%s3629_s2] sm:$0x7]  ;;  %s3198_s27 = smov 32   ;;  %v107_v35 = vand.u32 127, %v101_v33  ;;  %v3199_v48 = vmov -1e+30  }
  0x21   :  { %v158_v14 = vperm.slane %v155_v12, 1  ;;  %v157_v18 = vperm.slane %v155_v12, 0  ;;  %v159_v26 = vperm.slane %v155_v12, 2  ;;  %vm356_vm2 = vcmask 130048   ;;  %s3201_s0 = smov [#allocation9]  }
  0x22   :  { %295 = vmatpush.bf16.msra.mxu0 %v2296_v34  ;;  %v102_v34 = vshrl.u32 %v101_v33, 7  ;;  %v108_v37 = vcvt.s32.f32 %v107_v35  ;;  %vm478_vm4 = vcmask 523520   ;;  %vm556_vm5 = vcmask 785920  }
  0x23   :  { %309 = vmatpush.bf16.msra.mxu1 %v2300_v38  ;;  %vm634_vm6 = vcmask 1048320  }
  0x24   :  { %322 = vmatpush.bf16.msra.mxu2 %v2316_v51  ;;  %v104_v36 = vcvt.s32.f32 %v102_v34  ;;  %v115_v39 = vadd.f32 0.5, %v108_v37  ;;  %v103_v40 = vadd.s32 8, %v102_v34 }
  0x26   :  { %296 = vmatpush.bf16.msra.mxu0 %v2284_v47  ;;  %v109_v38 = vadd.f32 0.5, %v104_v36  ;;  %v116_v42 = vmul.f32 0.125, %v115_v39  ;;  %v105_v43 = vcvt.s32.f32 %v103_v40 }
  0x27   :  { %310 = vmatpush.bf16.msra.mxu1 %v2288_v49 }
  0x28   :  { %323 = vmatpush.bf16.msra.mxu2 %v2304_v61  ;;  %v111_v41 = vmul.f32 0.125, %v109_v38  ;;  %v117_v45 = vfloor.f32 %v116_v42  ;;  %v110_v46 = vadd.f32 0.5, %v105_v43 }
  0x2a   :  { %297 = vmatpush.bf16.msra.mxu0 %v2272_v52  ;;  %v113_v44 = vfloor.f32 %v111_v41  ;;  %v112_v47 = vmul.f32 0.125, %v110_v46 }
  0x2b   :  { %311 = vmatpush.bf16.msra.mxu1 %v2276_v55 }
  0x2c   :  { %324 = vmatpush.bf16.msra.mxu2 %v2292_v4  ;;  %vm118_vm1 = vcmp.eq.f32.partialorder %v113_v44, %v117_v45  ;;  %v114_v50 = vfloor.f32 %v112_v47 }
  0x2d   :  { %v3318_v49 = vsel %vm118_vm1, 0.0, %v3199_v48 }
  0x2e   :  { %298 = vmatpush.bf16.msra.mxu0 %v2260_v62  ;;  %vm119_vm3 = vcmp.eq.f32.partialorder %v114_v50, %v117_v45 }
  0x2f   :  { %312 = vmatpush.bf16.msra.mxu1 %v2264_v2  ;;  %v3322_v54 = vsel %vm119_vm3, 0.0, %v3199_v48 }
  0x30   :  { %325 = vmatpush.bf16.msra.mxu2 %v2280_v7 }
  0x31   :  { %299 = vmatmul.bf16.vlgmr.msra.gmra.mxu0 %v122_v3 }
  0x32   :  { %313 = vmatmul.bf16.vlgmr.msra.gmra.mxu1 %v122_v3 }
  0x34   :  { %326 = vmatpush.bf16.msra.mxu2 %v2268_v10 }
  0x37   :  { %327 = vmatmul.bf16.vlgmr.msra.gmra.mxu2 %v122_v3 }
  0xae   :  { %v300_v13 = vpop.f32.mrf.mxu0 }
  0xaf   :  { %v314_v11 = vpop.f32.mrf.mxu1  ;;  %v301_v22 = vadd.f32 %v300_v13, %v157_v18 }
  0xb0   :  { %v315_v16 = vadd.f32 %v314_v11, %v158_v14 }
  0xb6   :  { %v302_v20 = vpop.f32.mrf.mxu0 }
  0xb7   :  { %v316_v15 = vpop.f32.mrf.mxu1  ;;  %v303_v23 = vadd.f32 %v302_v20, %v157_v18 }
  0xb8   :  { %v317_v17 = vadd.f32 %v316_v15, %v158_v14 }
  0xb9   :  { %v333_v25 = vpack.c.bf16 %v303_v23, %v301_v22 }
  0xba   :  { %v334_v19 = vpack.c.bf16 %v317_v17, %v315_v16  ;;  %v328_v24 = vpop.f32.mrf.mxu2 }
  0xbb   :  { %v329_v27 = vadd.f32 %v328_v24, %v159_v26 }
  0xbc   :  { %404 = vrot.lane.b32.xlu2 %v334_v19, %s3197_s26  ;;  %v340_v21 = vsel %vm335_vm0, %v334_v19, 0 }
  0xbd   :  { %349 = vmatpush.bf16.xpose.msra.mxu3 %v340_v21 }
  0xc2   :  { %v330_v28 = vpop.f32.mrf.mxu2 }
  0xc3   :  { %v331_v29 = vadd.f32 %v330_v28, %v159_v26 }
  0xc4   :  { %401 = vrot.lane.b32.xlu2 %v333_v25, %s3197_s26  ;;  %2353 = vmatmul.msk.bf16.vlgmr.msra.gmra.mxu3 %vm335_vm0, %v333_v25 }
  0xc5   :  { %v3312_v30 = vpack.c.bf16 %v331_v29, %v329_v27 }
  0xc7   :  { %391 = vmatpush.bf16.msrb.mxu3 %v3312_v30 }
  0xcc   :  { %561 = vrot.lane.b32.xlu2 %v334_v19, %s3198_s27 }
  0xd4   :  { %559 = vrot.lane.b32.xlu2 %v333_v25, %s3198_s27 }
 0x116   :  { %v405_v31 = vpop.permute.xlu2 %404 }
 0x117   :  { %v410_v32 = vsel %vm335_vm0, %v405_v31, 0 }
 0x118   :  { %419 = vmatpush.bf16.xpose.msra.mxu3 %v410_v32 }
 0x11e   :  { %v402_v15 = vpop.permute.xlu2 %401 }
 0x126   :  { %v562_v16 = vpop.permute.xlu2 %561 }
 0x127   :  { %v567_v17 = vsel %vm335_vm0, %v562_v16, 0 }
 0x147   :  { %v351_v51 = vpop.f32.mrf.mxu3 }
 0x148   :  { %v352_v52 = vadd.f32 %v351_v51, %v3318_v49 }
 0x14a   :  { %v357_v53 = vsel %vm356_vm2, %v352_v52, -inf }
 0x14b   :  { %358 = vmax.xlane.f32.xlu0 %v357_v53 }
 0x14f   :  { %v353_v55 = vpop.f32.mrf.mxu3 }
 0x150   :  { %v354_v56 = vadd.f32 %v353_v55, %v3322_v54 }
 0x152   :  { %v360_v57 = vsel %vm356_vm2, %v354_v56, -inf }
 0x153   :  { %361 = vmax.xlane.f32.xlu0 %v360_v57 }
 0x167   :  { %483 = vrot.lane.b32.xlu0 %v334_v19, %s3195_s23  ;;  %v560_v19 = vpop.permute.xlu2 %559 }
 0x1be   :  { %v359_v58 = vpop.xlane.xlu0 %358 }
 0x1bf   :  { %v363_v59 = vsub.f32 %v352_v52, %v359_v58 }
 0x1c1   :  { %v365_v61 = vmul.f32 1.442695, %v363_v59 }
 0x1c3   :  { %3004 = vpow2.f32 %v365_v61 }
 0x1c6   :  { %v362_v62 = vpop.xlane.xlu0 %361 }
 0x1c7   :  { %v364_v0 = vsub.f32 %v354_v56, %v362_v62 }
 0x1c9   :  { %v3005_v1 = vpop.eup %3004  ;;  %v367_v2 = vmul.f32 1.442695, %v364_v0 }
 0x1ca   :  { %v369_v3 = vsel %vm356_vm2, %v3005_v1, 0.0 }
 0x1cb   :  { %3006 = vpow2.f32 %v367_v2  ;;  %370 = vadd.xlane.f32.xlu1 %v369_v3 }
 0x1d1   :  { %v3007_v4 = vpop.eup %3006 }
 0x1d2   :  { %v372_v5 = vsel %vm356_vm2, %v3007_v4, 0.0 }
 0x1d3   :  { %373 = vadd.xlane.f32.xlu1 %v372_v5 }
 0x1d9   :  { %v484_v12 = vpop.permute.xlu0 %483 }
 0x1da   :  { %v489_v14 = vsel %vm335_vm0, %v484_v12, 0 }
 0x1ec   :  { %481 = vrot.lane.b32.xlu1 %v333_v25, %s3195_s23 }
 0x23e   :  { %v371_v6 = vpop.xlane.xlu1 %370 }
 0x23f   :  { %3008 = vrcp.f32 %v371_v6 }
 0x245   :  { %v3009_v8 = vpop.eup %3008 }
 0x246   :  { %v374_v7 = vpop.xlane.xlu1 %373  ;;  %v377_v10 = vmul.f32 %v3009_v8, %v3005_v1 }
 0x247   :  { %3010 = vrcp.f32 %v374_v7 }
 0x24d   :  { %v3011_v9 = vpop.eup %3010 }
 0x24e   :  { %v378_v11 = vmul.f32 %v3011_v9, %v3007_v4 }
 0x250   :  { %v379_v13 = vpack.c.bf16 %v378_v11, %v377_v10 }
 0x252   :  { %2354 = vmatmul.msk.bf16.vlgmr.msrb.gmra.mxu3 %vm356_vm2, %v379_v13 }
 0x253   :  { %498 = vmatpush.bf16.xpose.msrb.mxu3 %v489_v14 }
 0x25e   :  { %v482_v18 = vpop.permute.xlu1 %481 }
 0x262   :  { %2355 = vmatmul.msk.bf16.vlgmr.msra.gmra.mxu3 %vm335_vm0, %v402_v15 }
 0x263   :  { %576 = vmatpush.bf16.xpose.msra.mxu3 %v567_v17 }
 0x272   :  { %2357 = vmatmul.msk.bf16.vlgmr.msrb.gmra.mxu3 %vm335_vm0, %v482_v18 }
 0x282   :  { %2359 = vmatmul.msk.bf16.vlgmr.msra.gmra.mxu3 %vm335_vm0, %v560_v19 }
 0x2d5   :  { %v393_v20 = vpop.f32.mrf.mxu3 }
 0x2d6   :  { %398 = vst.msk [vmem:[#allocation2] sm:$0xff] %vm335_vm0, %v393_v20 }
 0x2dd   :  { %v395_v21 = vpop.f32.mrf.mxu3 }
 0x2de   :  { %399 = vst.msk [vmem:[#allocation2 + $0x8] sm:$0xff] %vm335_vm0, %v395_v21 }
 0x2e5   :  { %v421_v22 = vpop.f32.mrf.mxu3 }
 0x2e6   :  { %v422_v23 = vadd.f32 %v421_v22, %v3318_v49 }
 0x2e8   :  { %v426_v24 = vsel %vm356_vm2, %v422_v23, -inf }
 0x2e9   :  { %427 = vmax.xlane.f32.xlu2 %v426_v24 }
 0x2ed   :  { %v423_v25 = vpop.f32.mrf.mxu3 }
 0x2ee   :  { %v424_v26 = vadd.f32 %v423_v25, %v3322_v54 }
 0x2f0   :  { %v429_v27 = vsel %vm356_vm2, %v424_v26, -inf }
 0x2f1   :  { %430 = vmax.xlane.f32.xlu0 %v429_v27 }
 0x2f5   :  { %v500_v28 = vpop.f32.mrf.mxu3 }
 0x2f6   :  { %v501_v29 = vadd.f32 %v500_v28, %v3318_v49 }
 0x2f8   :  { %v505_v31 = vsel %vm356_vm2, %v501_v29, -inf }
 0x2f9   :  { %506 = vmax.xlane.f32.xlu1 %v505_v31 }
 0x2fd   :  { %v502_v32 = vpop.f32.mrf.mxu3 }
 0x2fe   :  { %v503_v33 = vadd.f32 %v502_v32, %v3322_v54 }
 0x300   :  { %v508_v34 = vsel %vm356_vm2, %v503_v33, -inf }
 0x301   :  { %509 = vmax.xlane.f32.xlu2 %v508_v34 }
 0x305   :  { %v578_v35 = vpop.f32.mrf.mxu3 }
 0x306   :  { %v579_v36 = vadd.f32 %v578_v35, %v3318_v49 }
 0x308   :  { %v583_v37 = vsel %vm356_vm2, %v579_v36, -inf }
 0x309   :  { %584 = vmax.xlane.f32.xlu0 %v583_v37 }
 0x30d   :  { %v580_v38 = vpop.f32.mrf.mxu3 }
 0x30e   :  { %v581_v39 = vadd.f32 %v580_v38, %v3322_v54 }
 0x310   :  { %v586_v40 = vsel %vm356_vm2, %v581_v39, -inf }
 0x311   :  { %587 = vmax.xlane.f32.xlu2 %v586_v40 }
 0x329   :  { %450 = vrot.lane.b32.xlu2 %v3312_v30, %s3197_s26 }
 0x35c   :  { %v428_v41 = vpop.xlane.xlu2 %427 }
 0x35d   :  { %v432_v42 = vsub.f32 %v422_v23, %v428_v41 }
 0x35f   :  { %v434_v43 = vmul.f32 1.442695, %v432_v42 }
 0x361   :  { %3012 = vpow2.f32 %v434_v43  ;;  %v2872_v43 = vld [vmem:[%s3630_s3 + $0x38] sm:$0xff] }
 0x362   :  { %708 = vmatpush.bf16.msrb.mxu1 %v2872_v43  ;;  %v2880_v43 = vld [vmem:[#allocation6 + $0x34] sm:$0xf0] }
 0x364   :  { %v431_v44 = vpop.xlane.xlu0 %430 }
 0x365   :  { %v433_v45 = vsub.f32 %v424_v26, %v431_v44  ;;  %v2871_v44 = vld [vmem:[%s3630_s3 + $0x30] sm:$0xff] }
 0x366   :  { %709 = vmatpush.bf16.msrb.mxu1 %v2871_v44  ;;  %v2879_v44 = vld [vmem:[#allocation6 + $0x34] sm:$0xf] }
 0x367   :  { %v3013_v46 = vpop.eup %3012  ;;  %v436_v47 = vmul.f32 1.442695, %v433_v45  ;;  %v2870_v45 = vld [vmem:[%s3630_s3 + $0x28] sm:$0xff] }
 0x368   :  { %v438_v48 = vsel %vm356_vm2, %v3013_v46, 0.0 }
 0x369   :  { %3014 = vpow2.f32 %v436_v47  ;;  %439 = vadd.xlane.f32.xlu1 %v438_v48  ;;  %v2868_v47 = vld [vmem:[%s3630_s3 + $0x18] sm:$0xff] }
 0x36a   :  { %710 = vmatpush.bf16.msrb.mxu1 %v2870_v45 }
 0x36c   :  { %v507_v50 = vpop.xlane.xlu1 %506 }
 0x36d   :  { %v511_v51 = vsub.f32 %v501_v29, %v507_v50  ;;  %v2867_v50 = vld [vmem:[%s3630_s3 + $0x10] sm:$0xff] }
 0x36f   :  { %v3015_v52 = vpop.eup %3014  ;;  %v513_v53 = vmul.f32 1.442695, %v511_v51  ;;  %v2866_v51 = vld [vmem:[%s3630_s3 + $0x8] sm:$0xff] }
 0x370   :  { %v441_v55 = vsel %vm356_vm2, %v3015_v52, 0.0 }
 0x371   :  { %3016 = vpow2.f32 %v513_v53  ;;  %442 = vadd.xlane.f32.xlu0 %v441_v55 }
 0x374   :  { %v510_v56 = vpop.xlane.xlu2 %509 }
 0x375   :  { %v512_v57 = vsub.f32 %v503_v33, %v510_v56 }
 0x377   :  { %v3017_v58 = vpop.eup %3016  ;;  %v515_v59 = vmul.f32 1.442695, %v512_v57 }
 0x378   :  { %v517_v61 = vsel %vm356_vm2, %v3017_v58, 0.0 }
 0x379   :  { %3018 = vpow2.f32 %v515_v59  ;;  %518 = vadd.xlane.f32.xlu1 %v517_v61  ;;  %v2991_v61 = vld [vmem:[%s3631_s4] ss:$0 sm:$0xff] }
 0x37c   :  { %v585_v62 = vpop.xlane.xlu0 %584 }
 0x37d   :  { %v589_v0 = vsub.f32 %v579_v36, %v585_v62 }
 0x37f   :  { %v3019_v1 = vpop.eup %3018  ;;  %v591_v2 = vmul.f32 1.442695, %v589_v0 }
 0x380   :  { %v520_v3 = vsel %vm356_vm2, %v3019_v1, 0.0 }
 0x381   :  { %3020 = vpow2.f32 %v591_v2  ;;  %521 = vadd.xlane.f32.xlu0 %v520_v3 }
 0x384   :  { %v588_v4 = vpop.xlane.xlu2 %587 }
 0x385   :  { %v590_v5 = vsub.f32 %v581_v39, %v588_v4 }
 0x387   :  { %v3021_v6 = vpop.eup %3020  ;;  %v593_v7 = vmul.f32 1.442695, %v590_v5  ;;  %v3200_v5 = vmov 128.0  }
 0x388   :  { %v595_v8 = vsel %vm356_vm2, %v3021_v6, 0.0 }
 0x389   :  { %3022 = vpow2.f32 %v593_v7  ;;  %596 = vadd.xlane.f32.xlu1 %v595_v8 }
 0x38c   :  { %v451_v9 = vpop.permute.xlu2 %450 }
 0x38d   :  { %463 = vmatpush.bf16.msrb.mxu0 %v451_v9 }
 0x38f   :  { %v3023_v10 = vpop.eup %3022 }
 0x390   :  { %v598_v11 = vsel %vm356_vm2, %v3023_v10, 0.0 }
 0x391   :  { %599 = vadd.xlane.f32.xlu0 %v598_v11 }
 0x3a2   :  { %528 = vrot.lane.b32.xlu1 %v3312_v30, %s3195_s23 }
 0x3a5   :  { %606 = vrot.lane.b32.xlu0 %v3312_v30, %s3198_s27 }
 0x3dc   :  { %v440_v12 = vpop.xlane.xlu1 %439 }
 0x3dd   :  { %3024 = vrcp.f32 %v440_v12 }
 0x3e3   :  { %v3025_v14 = vpop.eup %3024 }
 0x3e4   :  { %v443_v13 = vpop.xlane.xlu0 %442  ;;  %v446_v16 = vmul.f32 %v3025_v14, %v3013_v46  ;;  %v2869_v46 = vld [vmem:[%s3630_s3 + $0x20] sm:$0xff] }
 0x3e5   :  { %3026 = vrcp.f32 %v443_v13  ;;  %711 = vmatpush.bf16.msrb.mxu1 %v2869_v46  ;;  %v2421_v46 = vld [vmem:[#allocation6 + $0x38] sm:$0xf0] }
 0x3e9   :  { %712 = vmatpush.bf16.msrb.mxu1 %v2868_v47  ;;  %v2424_v47 = vor.u32 %v2879_v44, %v2421_v46  ;;  %v2900_v44 = vld [vmem:[#allocation8 + $0x58] sm:$0xff]  ;;  %v2899_v46 = vld [vmem:[#allocation8 + $0x50] sm:$0xff] }
 0x3eb   :  { %v3027_v15 = vpop.eup %3026 }
 0x3ec   :  { %v447_v17 = vmul.f32 %v3027_v15, %v3015_v52  ;;  %v519_v20 = vpop.xlane.xlu1 %518  ;;  %v2865_v52 = vld [vmem:[%s3630_s3] sm:$0xff] }
 0x3ed   :  { %713 = vmatpush.bf16.msrb.mxu1 %v2867_v50  ;;  %v2878_v50 = vld [vmem:[#allocation6 + $0x24] sm:$0xf0] }
 0x3ee   :  { %v448_v18 = vpack.c.bf16 %v447_v17, %v446_v16 }
 0x3f0   :  { %2356 = vmatmul.msk.bf16.vlgmr.msrb.gmra.mxu0 %vm356_vm2, %v448_v18  ;;  %v2451_v18 = vld [vmem:[#allocation6 + $0x70] sm:$0xf] }
 0x3f1   :  { %714 = vmatpush.bf16.msrb.mxu1 %v2866_v51  ;;  %v2877_v51 = vld [vmem:[#allocation6 + $0x24] sm:$0xf] }
 0x3f4   :  { %v522_v19 = vpop.xlane.xlu0 %521 }
 0x3f5   :  { %3028 = vrcp.f32 %v522_v19  ;;  %715 = vmatpush.bf16.msrb.mxu1 %v2865_v52  ;;  %v2888_v19 = vld [vmem:[#allocation6 + $0x74] sm:$0xf0] }
 0x3f6   :  { %3030 = vrcp.f32 %v519_v20  ;;  %v2887_v20 = vld [vmem:[#allocation6 + $0x74] sm:$0xf] }
 0x3fb   :  { %v3029_v30 = vpop.eup %3028 }
 0x3fc   :  { %v597_v22 = vpop.xlane.xlu1 %596  ;;  %v3031_v23 = vpop.eup %3030  ;;  %v526_v25 = vmul.f32 %v3029_v30, %v3019_v1 }
 0x3fd   :  { %v525_v27 = vmul.f32 %v3031_v23, %v3017_v58  ;;  %v2443_v23 = vld [vmem:[#allocation6 + $0x60] sm:$0xf] }
 0x3ff   :  { %v527_v31 = vpack.c.bf16 %v526_v25, %v525_v27  ;;  %v2885_v25 = vld [vmem:[#allocation6 + $0x64] sm:$0xf]  ;;  %v2445_v27 = vld [vmem:[#allocation6 + $0x68] sm:$0xf0] }
 0x404   :  { %v600_v21 = vpop.xlane.xlu0 %599 }
 0x405   :  { %3032 = vrcp.f32 %v600_v21  ;;  %v2452_v21 = vor.u32 %v2888_v19, %v2451_v18  ;;  %v2894_v19 = vld [vmem:[#allocation8 + $0x28] sm:$0xff] }
 0x406   :  { %3034 = vrcp.f32 %v597_v22  ;;  %v2453_v22 = vld [vmem:[#allocation6 + $0x78] sm:$0xf0] }
 0x407   :  { %3036 = vrcp.f32 %v3200_v5  ;;  %v2456_v30 = vor.u32 %v2887_v20, %v2453_v22  ;;  %v2902_v20 = vld [vmem:[#allocation8 + $0x68] sm:$0xff] }
 0x409   :  { %900 = vmatpush.bf16.msrb.mxu3 %v2456_v30  ;;  %v2893_v30 = vld [vmem:[#allocation8 + $0x20] sm:$0xff] }
 0x40b   :  { %v3033_v24 = vpop.eup %3032 }
 0x40c   :  { %v3035_v26 = vpop.eup %3034  ;;  %v604_v29 = vmul.f32 %v3033_v24, %v3023_v10  ;;  %v2886_v24 = vld [vmem:[#allocation6 + $0x64] sm:$0xf0] }
 0x40d   :  { %v603_v32 = vmul.f32 %v3035_v26, %v3021_v6  ;;  %v3037_v6 = vpop.eup %3036  ;;  %v2444_v26 = vor.u32 %v2886_v24, %v2443_v23  ;;  %v2901_v23 = vld [vmem:[#allocation8 + $0x60] sm:$0xff] }
 0x40e   :  { %v731_v7 = vmul.f32 128.0, %v3037_v6  ;;  %vm735_vm7 = vweird.f32 %v3037_v6 }
 0x40f   :  { %v605_v34 = vpack.c.bf16 %v604_v29, %v603_v32  ;;  %v2435_v29 = vld [vmem:[#allocation6 + $0x50] sm:$0xf]  ;;  %v2883_v32 = vld [vmem:[#allocation6 + $0x54] sm:$0xf] }
 0x410   :  { %v732_v8 = vsub.f32 1.0, %v731_v7 }
 0x412   :  { %v733_v9 = vmul.f32 %v3037_v6, %v732_v8 }
 0x414   :  { %v529_v28 = vpop.permute.xlu1 %528  ;;  %v734_v10 = vadd.f32 %v3037_v6, %v733_v9  ;;  %v2896_v9 = vld [vmem:[#allocation8 + $0x38] sm:$0xff] }
 0x415   :  { %541 = vmatpush.bf16.msrb.mxu2 %v529_v28  ;;  %v2448_v28 = vor.u32 %v2885_v25, %v2445_v27 }
 0x416   :  { %v3406_v11 = vsel %vm735_vm7, %v3037_v6, %v734_v10  ;;  %v2904_v10 = vld [vmem:[#allocation8 + $0x78] sm:$0xff] }
 0x417   :  { %v607_v33 = vpop.permute.xlu0 %606  ;;  %901 = vmatpush.bf16.msrb.mxu3 %v2448_v28  ;;  %1066 = vmatpush.bf16.msra.mxu1 %v2904_v10 }
 0x418   :  { %2358 = vmatmul.msk.bf16.vlgmr.msrb.gmra.mxu2 %vm356_vm2, %v527_v31  ;;  %619 = vmatpush.bf16.msra.mxu0 %v607_v33  ;;  %v2884_v31 = vld [vmem:[#allocation6 + $0x54] sm:$0xf0] }
 0x419   :  { %886 = vmatpush.bf16.msra.mxu2 %v2452_v21  ;;  %v2436_v33 = vor.u32 %v2884_v31, %v2435_v29 }
 0x41b   :  { %2360 = vmatmul.msk.bf16.vlgmr.msra.gmra.mxu0 %vm356_vm2, %v605_v34  ;;  %v2437_v34 = vld [vmem:[#allocation6 + $0x58] sm:$0xf0] }
 0x41c   :  { %1052 = vmatpush.bf16.msrb.mxu0 %v2896_v9 }
 0x41d   :  { %887 = vmatpush.bf16.msra.mxu2 %v2444_v26 }
 0x421   :  { %888 = vmatpush.bf16.msra.mxu2 %v2436_v33 }
 0x46d   :  { %v465_v35 = vpop.f32.mrf.mxu0 }
 0x46e   :  { %472 = vrot.lane.b32.xlu2 %v465_v35, %s3198_s27  ;;  %v2440_v35 = vor.u32 %v2883_v32, %v2437_v34  ;;  %v2992_v34 = vld [vmem:[%s3636_s9] ss:$0 sm:$0xff] }
 0x470   :  { %902 = vmatpush.bf16.msrb.mxu3 %v2440_v35 }
 0x475   :  { %v467_v36 = vpop.f32.mrf.mxu0 }
 0x476   :  { %474 = vrot.lane.b32.xlu2 %v467_v36, %s3198_s27  ;;  %v2427_v36 = vld [vmem:[#allocation6 + $0x40] sm:$0xf] }
 0x498   :  { %v621_v37 = vpop.f32.mrf.mxu0 }
 0x499   :  { %628 = vrot.lane.b32.xlu1 %v621_v37, %s3197_s26  ;;  %v2882_v37 = vld [vmem:[#allocation6 + $0x44] sm:$0xf0] }
 0x49b   :  { %v543_v38 = vpop.f32.mrf.mxu2 }
 0x49c   :  { %550 = vrot.lane.b32.xlu2 %v543_v38, %s3195_s23  ;;  %v2881_v38 = vld [vmem:[#allocation6 + $0x44] sm:$0xf] }
 0x4a0   :  { %v623_v39 = vpop.f32.mrf.mxu0 }
 0x4a3   :  { %v545_v40 = vpop.f32.mrf.mxu2 }
 0x4a4   :  { %552 = vrot.lane.b32.xlu0 %v545_v40, %s3195_s23  ;;  %630 = vrot.lane.b32.xlu2 %v623_v39, %s3197_s26  ;;  %v2428_v39 = vor.u32 %v2882_v37, %v2427_v36  ;;  %v2429_v40 = vld [vmem:[#allocation6 + $0x48] sm:$0xf0] }
 0x4a6   :  { %889 = vmatpush.bf16.msra.mxu2 %v2428_v39  ;;  %v2993_v39 = vld [vmem:[%s3637_s10] ss:$0 sm:$0xff] }
 0x4c8   :  { %v473_v41 = vpop.permute.xlu2 %472 }
 0x4c9   :  { %479 = vst.msk [vmem:[#allocation2] sm:$0xff] %vm478_vm4, %v473_v41  ;;  %v2432_v41 = vor.u32 %v2881_v38, %v2429_v40 }
 0x4cb   :  { %903 = vmatpush.bf16.msrb.mxu3 %v2432_v41 }
 0x4cf   :  { %904 = vmatpush.bf16.msrb.mxu3 %v2424_v47  ;;  %v2898_v47 = vld [vmem:[#allocation8 + $0x48] sm:$0xff] }
 0x4d0   :  { %v475_v42 = vpop.permute.xlu2 %474 }
 0x4d1   :  { %480 = vst.msk [vmem:[#allocation2 + $0x8] sm:$0xff] %vm478_vm4, %v475_v42  ;;  %v2419_v42 = vld [vmem:[#allocation6 + $0x30] sm:$0xf] }
 0x4d2   :  { %v2420_v45 = vor.u32 %v2880_v43, %v2419_v42 }
 0x4d4   :  { %890 = vmatpush.bf16.msra.mxu2 %v2420_v45  ;;  %v2891_v45 = vld [vmem:[#allocation8 + $0x10] sm:$0xff] }
 0x4f6   :  { %v551_v48 = vpop.permute.xlu2 %550 }
 0x4f7   :  { %557 = vst.msk [vmem:[#allocation2] sm:$0xff] %vm556_vm5, %v551_v48  ;;  %v2411_v48 = vld [vmem:[#allocation6 + $0x20] sm:$0xf] }
 0x4f8   :  { %v2412_v52 = vor.u32 %v2878_v50, %v2411_v48  ;;  %v2889_v48 = vld [vmem:[#allocation8] sm:$0xff] }
 0x4f9   :  { %v2897_v50 = vld [vmem:[#allocation8 + $0x40] sm:$0xff] }
 0x4fa   :  { %891 = vmatpush.bf16.msra.mxu2 %v2412_v52 }
 0x4fe   :  { %v631_v56 = vpop.permute.xlu2 %630 }
 0x50b   :  { %v629_v53 = vpop.permute.xlu1 %628 }
 0x50c   :  { %635 = vst.msk [vmem:[#allocation2] sm:$0xff] %vm634_vm6, %v629_v53  ;;  %v2413_v53 = vld [vmem:[#allocation6 + $0x28] sm:$0xf0] }
 0x513   :  { %v637_v57 = vld [vmem:[#allocation2] sm:$0xff] }
 0x516   :  { %v553_v55 = vpop.permute.xlu0 %552 }
 0x517   :  { %558 = vst.msk [vmem:[#allocation2 + $0x8] sm:$0xff] %vm556_vm5, %v553_v55  ;;  %v2416_v55 = vor.u32 %v2877_v51, %v2413_v53  ;;  %v800_v51 = vld [vmem:[%s3633_s6] sm:$0x3] }
 0x518   :  { %636 = vst.msk [vmem:[#allocation2 + $0x8] sm:$0xff] %vm634_vm6, %v631_v56  ;;  %v2403_v56 = vld [vmem:[#allocation6 + $0x10] sm:$0xf] }
 0x519   :  { %905 = vmatpush.bf16.msrb.mxu3 %v2416_v55  ;;  %v802_v55 = vperm.slane %v800_v51, 0 }
 0x51f   :  { %v638_v58 = vld [vmem:[#allocation2 + $0x8] sm:$0xff] }
 0x520   :  { %v639_v59 = vpack.c.bf16 %v638_v58, %v637_v57  ;;  %v2876_v57 = vld [vmem:[#allocation6 + $0x14] sm:$0xf0]  ;;  %v2875_v58 = vld [vmem:[#allocation6 + $0x14] sm:$0xf] }
 0x522   :  { %716 = vmatmul.bf16.vlgmr.msrb.gmra.mxu1 %v639_v59  ;;  %v2404_v59 = vor.u32 %v2876_v57, %v2403_v56  ;;  %v803_v56 = vperm.slane %v800_v51, 1 }
 0x524   :  { %892 = vmatpush.bf16.msra.mxu2 %v2404_v59 }
 0x59f   :  { %v717_v62 = vpop.f32.mrf.mxu1 }
 0x5a0   :  { %v718_v0 = vadd.f32 %v2991_v61, %v717_v62  ;;  %v2395_v62 = vld [vmem:[#allocation6] sm:$0xf] }
 0x5a2   :  { %v722_v1 = vadd.f32 %v718_v0, %v3296_v60  ;;  %v2874_v0 = vld [vmem:[#allocation6 + $0x4] sm:$0xf0] }
 0x5a3   :  { %v2396_v6 = vor.u32 %v2874_v0, %v2395_v62 }
 0x5a4   :  { %726 = vadd.xlane.f32.xlu0 %v722_v1 }
 0x5a5   :  { %893 = vmatpush.bf16.msra.mxu2 %v2396_v6 }
 0x5a7   :  { %v719_v2 = vpop.f32.mrf.mxu1 }
 0x5a8   :  { %v720_v3 = vadd.f32 %v2991_v61, %v719_v2  ;;  %v2405_v61 = vld [vmem:[#allocation6 + $0x18] sm:$0xf0] }
 0x5a9   :  { %v2408_v2 = vor.u32 %v2875_v58, %v2405_v61 }
 0x5aa   :  { %v723_v4 = vadd.f32 %v720_v3, %v3301_v63  ;;  %v2873_v3 = vld [vmem:[#allocation6 + $0x4] sm:$0xf] }
 0x5ab   :  { %906 = vmatpush.bf16.msrb.mxu3 %v2408_v2 }
 0x5ac   :  { %728 = vadd.xlane.f32.xlu1 %v723_v4 }
 0x617   :  { %v727_v12 = vpop.xlane.xlu0 %726 }
 0x618   :  { %v737_v13 = vmul.f32 %v3406_v11, %v727_v12 }
 0x61a   :  { %v3409_v60 = vsub.f32 %v722_v1, %v737_v13 }
 0x61c   :  { %v741_v14 = vmul.f32 %v3409_v60, %v3409_v60 }
 0x61e   :  { %743 = vadd.xlane.f32.xlu2 %v741_v14  ;;  %v2895_v14 = vld [vmem:[#allocation8 + $0x30] sm:$0xff] }
 0x61f   :  { %v729_v63 = vpop.xlane.xlu1 %728  ;;  %1053 = vmatpush.bf16.msrb.mxu0 %v2895_v14 }
 0x620   :  { %v738_v15 = vmul.f32 %v3406_v11, %v729_v63  ;;  %v2903_v63 = vld [vmem:[#allocation8 + $0x70] sm:$0xff] }
 0x621   :  { %1067 = vmatpush.bf16.msra.mxu1 %v2903_v63 }
 0x622   :  { %v3414_v16 = vsub.f32 %v723_v4, %v738_v15  ;;  %v2397_v4 = vld [vmem:[#allocation6 + $0x8] sm:$0xf0] }
 0x623   :  { %v2400_v7 = vor.u32 %v2873_v3, %v2397_v4  ;;  %1054 = vmatpush.bf16.msrb.mxu0 %v2894_v19 }
 0x624   :  { %v742_v17 = vmul.f32 %v3414_v16, %v3414_v16 }
 0x625   :  { %907 = vmatpush.bf16.msrb.mxu3 %v2400_v7  ;;  %1068 = vmatpush.bf16.msra.mxu1 %v2902_v20  ;;  %v2994_v7 = vld [vmem:[%s3635_s8] ss:$0 sm:$0xff] }
 0x626   :  { %745 = vadd.xlane.f32.xlu0 %v742_v17 }
 0x627   :  { %1055 = vmatpush.bf16.msrb.mxu0 %v2893_v30 }
 0x629   :  { %1069 = vmatpush.bf16.msra.mxu1 %v2901_v23 }
 0x62d   :  { %1070 = vmatpush.bf16.msra.mxu1 %v2900_v44  ;;  %v2584_v44 = vld [vmem:[#allocation3 + $0x138] sm:$0xf] }
 0x631   :  { %1071 = vmatpush.bf16.msra.mxu1 %v2899_v46  ;;  %v2920_v46 = vld [vmem:[#allocation3 + $0x13c] sm:$0xf] }
 0x635   :  { %1072 = vmatpush.bf16.msra.mxu1 %v2898_v47  ;;  %v2586_v47 = vld [vmem:[#allocation3 + $0x144] sm:$0xf0] }
 0x636   :  { %v2589_v51 = vor.u32 %v2920_v46, %v2586_v47 }
 0x639   :  { %1073 = vmatpush.bf16.msra.mxu1 %v2897_v50  ;;  %v2922_v50 = vld [vmem:[#allocation3 + $0x148] sm:$0xf0] }
 0x691   :  { %v744_v1 = vpop.xlane.xlu2 %743 }
 0x692   :  { %v747_v5 = vmul.f32 %v744_v1, %v3406_v11 }
 0x694   :  { %v749_v8 = vadd.f32 1e-05, %v747_v5 }
 0x696   :  { %3038 = vrsqrt.f32 %v749_v8  ;;  %vm757_vm9 = vweird.f32 %v749_v8 }
 0x699   :  { %v746_v12 = vpop.xlane.xlu0 %745 }
 0x69a   :  { %v748_v13 = vmul.f32 %v746_v12, %v3406_v11 }
 0x69c   :  { %v3039_v15 = vpop.eup %3038  ;;  %v750_v17 = vadd.f32 1e-05, %v748_v13 }
 0x69d   :  { %v752_v18 = vmul.f32 %v3039_v15, %v749_v8  ;;  %vm758_vm8 = vweird.f32 %v3039_v15 }
 0x69e   :  { %3040 = vrsqrt.f32 %v750_v17  ;;  %vm759_vm10 = vmor %vm757_vm9, %vm758_vm8  ;;  %vm767_vm12 = vweird.f32 %v750_v17 }
 0x69f   :  { %v753_v21 = vmul.f32 %v3039_v15, %v752_v18 }
 0x6a1   :  { %v754_v22 = vmul.f32 0.5, %v753_v21 }
 0x6a3   :  { %v755_v24 = vsub.f32 1.5, %v754_v22 }
 0x6a4   :  { %v3041_v25 = vpop.eup %3040 }
 0x6a5   :  { %v756_v26 = vmul.f32 %v3039_v15, %v755_v24  ;;  %v762_v27 = vmul.f32 %v3041_v25, %v750_v17  ;;  %vm768_vm11 = vweird.f32 %v3041_v25 }
 0x6a6   :  { %vm769_vm13 = vmor %vm767_vm12, %vm768_vm11 }
 0x6a7   :  { %v763_v28 = vmul.f32 %v3041_v25, %v762_v27  ;;  %v760_v29 = vsel %vm759_vm10, %v3039_v15, %v756_v26  ;;  %v2608_v26 = vld [vmem:[#allocation3 + $0x168] sm:$0xf]  ;;  %v2927_v27 = vld [vmem:[#allocation3 + $0x170] sm:$0xf0] }
 0x6a8   :  { %v771_v33 = vmul.f32 %v760_v29, %v3409_v60  ;;  %v2892_v60 = vld [vmem:[#allocation8 + $0x18] sm:$0xff]  ;;  %v2609_v29 = vor.u32 %v2927_v27, %v2608_v26  ;;  %v2544_v26 = vld [vmem:[#allocation3 + $0xe0] sm:$0xf]  ;;  %v2910_v27 = vld [vmem:[#allocation3 + $0xe8] sm:$0xf0] }
 0x6a9   :  { %v764_v31 = vmul.f32 0.5, %v763_v28  ;;  %1056 = vmatpush.bf16.msrb.mxu0 %v2892_v60  ;;  %v2926_v28 = vld [vmem:[#allocation3 + $0x16c] sm:$0xf] }
 0x6aa   :  { %v776_v38 = vmul.f32 %v2992_v34, %v771_v33  ;;  %v2928_v33 = vld [vmem:[#allocation3 + $0x178] sm:$0xf0]  ;;  %1305 = vmatpush.bf16.msrb.mxu2 %v2609_v29 }
 0x6ab   :  { %v765_v32 = vsub.f32 1.5, %v764_v31  ;;  %v2610_v31 = vld [vmem:[#allocation3 + $0x174] sm:$0xf0] }
 0x6ac   :  { %v781_v41 = vadd.f32 %v2993_v39, %v776_v38  ;;  %v2923_v38 = vld [vmem:[#allocation3 + $0x154] sm:$0xf] }
 0x6ad   :  { %v766_v35 = vmul.f32 %v3041_v25, %v765_v32  ;;  %1057 = vmatpush.bf16.msrb.mxu0 %v2891_v45  ;;  %v2616_v32 = vld [vmem:[#allocation3 + $0x170] sm:$0xf]  ;;  %v2921_v45 = vld [vmem:[#allocation3 + $0x140] sm:$0xf0] }
 0x6af   :  { %v770_v36 = vsel %vm769_vm13, %v3041_v25, %v766_v35  ;;  %v2617_v35 = vor.u32 %v2928_v33, %v2616_v32  ;;  %v2524_v32 = vld [vmem:[#allocation3 + $0xc0] sm:$0xf]  ;;  %v2906_v33 = vld [vmem:[#allocation3 + $0xc8] sm:$0xf0] }
 0x6b0   :  { %v772_v37 = vmul.f32 %v770_v36, %v3414_v16  ;;  %v2890_v16 = vld [vmem:[#allocation8 + $0x8] sm:$0xff]  ;;  %v2596_v36 = vld [vmem:[#allocation3 + $0x150] sm:$0xf] }
 0x6b1   :  { %1058 = vmatpush.bf16.msrb.mxu0 %v2890_v16  ;;  %v2585_v16 = vor.u32 %v2921_v45, %v2584_v44 }
 0x6b2   :  { %v777_v40 = vmul.f32 %v2992_v34, %v772_v37  ;;  %v2613_v34 = vor.u32 %v2926_v28, %v2610_v31  ;;  %v2924_v37 = vld [vmem:[#allocation3 + $0x158] sm:$0xf0]  ;;  %v2545_v31 = vor.u32 %v2910_v27, %v2544_v26 }
 0x6b4   :  { %v782_v42 = vadd.f32 %v2993_v39, %v777_v40  ;;  %1319 = vmatpush.bf16.msra.mxu3 %v2613_v34  ;;  %v2597_v39 = vor.u32 %v2924_v37, %v2596_v36  ;;  %v2598_v40 = vld [vmem:[#allocation3 + $0x15c] sm:$0xf0]  ;;  %v2905_v34 = vld [vmem:[#allocation3 + $0xc4] sm:$0xf]  ;;  %v2525_v36 = vor.u32 %v2906_v33, %v2524_v32  ;;  %v2526_v37 = vld [vmem:[#allocation3 + $0xcc] sm:$0xf0] }
 0x6b5   :  { %1059 = vmatpush.bf16.msrb.mxu0 %v2889_v48  ;;  %v2592_v48 = vld [vmem:[#allocation3 + $0x140] sm:$0xf] }
 0x6b6   :  { %v783_v43 = vpack.c.bf16 %v782_v42, %v781_v41  ;;  %1306 = vmatpush.bf16.msrb.mxu2 %v2597_v39  ;;  %v2907_v39 = vld [vmem:[#allocation3 + $0xd0] sm:$0xf0] }
 0x6b8   :  { %894 = vmatmul.bf16.vlgmr.msra.gmra.mxu2 %v783_v43  ;;  %908 = vmatmul.bf16.vlgmr.msrb.gmra.mxu3 %v783_v43  ;;  %v2601_v43 = vor.u32 %v2923_v38, %v2598_v40  ;;  %v2532_v38 = vld [vmem:[#allocation3 + $0xc8] sm:$0xf]  ;;  %v2529_v40 = vor.u32 %v2905_v34, %v2526_v37 }
 0x6b9   :  { %1333 = vmatpush.bf16.msra.mxu0 %v2617_v35 }
 0x6ba   :  { %1320 = vmatpush.bf16.msra.mxu3 %v2601_v43  ;;  %1307 = vmatpush.bf16.msrb.mxu2 %v2585_v16 }
 0x6be   :  { %1321 = vmatpush.bf16.msra.mxu3 %v2589_v51 }
 0x73b   :  { %v895_v52 = vpop.f32.mrf.mxu2  ;;  %v909_v53 = vpop.f32.mrf.mxu3 }
 0x73c   :  { %v896_v57 = vadd.f32 %v895_v52, %v802_v55  ;;  %v910_v58 = vadd.f32 %v909_v53, %v803_v56  ;;  %v2593_v52 = vor.u32 %v2922_v50, %v2592_v48  ;;  %v2572_v53 = vld [vmem:[#allocation3 + $0x120] sm:$0xf] }
 0x73e   :  { %v914_v1 = vmax.f32 %v896_v57, 0.0  ;;  %v915_v2 = vmax.f32 %v910_v58, 0.0  ;;  %v2574_v58 = vld [vmem:[#allocation3 + $0x12c] sm:$0xf0] }
 0x743   :  { %v897_v59 = vpop.f32.mrf.mxu2  ;;  %v911_v61 = vpop.f32.mrf.mxu3 }
 0x744   :  { %v898_v62 = vadd.f32 %v897_v59, %v802_v55  ;;  %v912_v0 = vadd.f32 %v911_v61, %v803_v56  ;;  %v2918_v55 = vld [vmem:[#allocation3 + $0x128] sm:$0xf0]  ;;  %v2917_v56 = vld [vmem:[#allocation3 + $0x124] sm:$0xf]  ;;  %v2580_v59 = vld [vmem:[#allocation3 + $0x128] sm:$0xf] }
 0x745   :  { %v2573_v57 = vor.u32 %v2918_v55, %v2572_v53  ;;  %v2919_v61 = vld [vmem:[#allocation3 + $0x130] sm:$0xf0] }
 0x746   :  { %v916_v3 = vmax.f32 %v898_v62, 0.0  ;;  %v917_v4 = vmax.f32 %v912_v0, 0.0  ;;  %v2577_v62 = vor.u32 %v2917_v56, %v2574_v58  ;;  %v2581_v0 = vor.u32 %v2919_v61, %v2580_v59  ;;  %v2995_v59 = vld [vmem:[%s3638_s11] ss:$0 sm:$0xff] }
 0x747   :  { %1308 = vmatpush.bf16.msrb.mxu2 %v2573_v57 }
 0x748   :  { %v918_v5 = vpack.c.bf16 %v916_v3, %v914_v1  ;;  %v919_v6 = vpack.c.bf16 %v917_v4, %v915_v2  ;;  %1322 = vmatpush.bf16.msra.mxu3 %v2577_v62  ;;  %v2560_v1 = vld [vmem:[#allocation3 + $0x108] sm:$0xf]  ;;  %v2915_v2 = vld [vmem:[#allocation3 + $0x110] sm:$0xf0]  ;;  %v2914_v3 = vld [vmem:[#allocation3 + $0x10c] sm:$0xf] }
 0x749   :  { %v2561_v4 = vor.u32 %v2915_v2, %v2560_v1  ;;  %v2996_v2 = vld [vmem:[%s3639_s12] ss:$0 sm:$0xff] }
 0x74a   :  { %1060 = vmatmul.bf16.vlgmr.msrb.gmra.mxu0 %v918_v5  ;;  %1074 = vmatmul.bf16.vlgmr.msra.gmra.mxu1 %v919_v6  ;;  %v2562_v5 = vld [vmem:[#allocation3 + $0x114] sm:$0xf0]  ;;  %v2568_v6 = vld [vmem:[#allocation3 + $0x110] sm:$0xf] }
 0x74b   :  { %1309 = vmatpush.bf16.msrb.mxu2 %v2561_v4 }
 0x7c7   :  { %v1061_v8 = vpop.f32.mrf.mxu0  ;;  %v1075_v9 = vpop.f32.mrf.mxu1 }
 0x7c8   :  { %v1062_v10 = vadd.f32 %v2994_v7, %v1061_v8  ;;  %v2565_v8 = vor.u32 %v2914_v3, %v2562_v5 }
 0x7ca   :  { %v1076_v12 = vadd.f32 %v1075_v9, %v1062_v10  ;;  %1323 = vmatpush.bf16.msra.mxu3 %v2565_v8  ;;  %v2548_v10 = vld [vmem:[#allocation3 + $0xf0] sm:$0xf] }
 0x7cc   :  { %v1080_v13 = vadd.f32 %v1076_v12, %v781_v41  ;;  %v2604_v41 = vld [vmem:[#allocation3 + $0x158] sm:$0xf]  ;;  %v2912_v12 = vld [vmem:[#allocation3 + $0xf8] sm:$0xf0] }
 0x7ce   :  { %1084 = vadd.xlane.f32.xlu1 %v1080_v13 }
 0x7cf   :  { %v1063_v14 = vpop.f32.mrf.mxu0  ;;  %v1077_v15 = vpop.f32.mrf.mxu1 }
 0x7d0   :  { %v1064_v63 = vadd.f32 %v2994_v7, %v1063_v14  ;;  %v2916_v7 = vld [vmem:[#allocation3 + $0x118] sm:$0xf0]  ;;  %v2549_v14 = vor.u32 %v2912_v12, %v2548_v10 }
 0x7d1   :  { %v2569_v9 = vor.u32 %v2916_v7, %v2568_v6 }
 0x7d2   :  { %v1078_v17 = vadd.f32 %v1077_v15, %v1064_v63  ;;  %v2550_v63 = vld [vmem:[#allocation3 + $0xfc] sm:$0xf0]  ;;  %v2556_v15 = vld [vmem:[#allocation3 + $0xf8] sm:$0xf]  ;;  %1310 = vmatpush.bf16.msrb.mxu2 %v2549_v14 }
 0x7d4   :  { %v1081_v18 = vadd.f32 %v1078_v17, %v782_v42  ;;  %v2925_v42 = vld [vmem:[#allocation3 + $0x160] sm:$0xf0] }
 0x7d5   :  { %v2605_v60 = vor.u32 %v2925_v42, %v2604_v41  ;;  %v2913_v17 = vld [vmem:[#allocation3 + $0x100] sm:$0xf0]  ;;  %v2533_v41 = vor.u32 %v2907_v39, %v2532_v38 }
 0x7d6   :  { %1086 = vadd.xlane.f32.xlu2 %v1081_v18 }
 0x7d7   :  { %1334 = vmatpush.bf16.msra.mxu0 %v2605_v60 }
 0x7db   :  { %1335 = vmatpush.bf16.msra.mxu0 %v2593_v52 }
 0x7df   :  { %1336 = vmatpush.bf16.msra.mxu0 %v2581_v0 }
 0x7e3   :  { %1337 = vmatpush.bf16.msra.mxu0 %v2569_v9 }
 0x841   :  { %v1085_v19 = vpop.xlane.xlu1 %1084 }
 0x842   :  { %v1088_v20 = vmul.f32 %v1085_v19, %v3406_v11  ;;  %v2557_v19 = vor.u32 %v2913_v17, %v2556_v15 }
 0x844   :  { %v3435_v21 = vsub.f32 %v1080_v13, %v1088_v20  ;;  %v2911_v13 = vld [vmem:[#allocation3 + $0xf4] sm:$0xf]  ;;  %1338 = vmatpush.bf16.msra.mxu0 %v2557_v19  ;;  %v2536_v20 = vld [vmem:[#allocation3 + $0xd8] sm:$0xf] }
 0x846   :  { %v1092_v22 = vmul.f32 %v3435_v21, %v3435_v21 }
 0x848   :  { %1094 = vadd.xlane.f32.xlu0 %v1092_v22  ;;  %v2909_v22 = vld [vmem:[#allocation3 + $0xe0] sm:$0xf0]  ;;  %1339 = vmatpush.bf16.msra.mxu0 %v2545_v31 }
 0x849   :  { %v1087_v30 = vpop.xlane.xlu2 %1086 }
 0x84a   :  { %v1089_v23 = vmul.f32 %v1087_v30, %v3406_v11  ;;  %v2908_v30 = vld [vmem:[#allocation3 + $0xdc] sm:$0xf] }
 0x84c   :  { %v3440_v24 = vsub.f32 %v1081_v18, %v1089_v23  ;;  %v2553_v18 = vor.u32 %v2911_v13, %v2550_v63  ;;  %v2537_v23 = vor.u32 %v2909_v22, %v2536_v20  ;;  %1340 = vmatpush.bf16.msra.mxu0 %v2533_v41 }
 0x84e   :  { %v1093_v25 = vmul.f32 %v3440_v24, %v3440_v24  ;;  %1324 = vmatpush.bf16.msra.mxu3 %v2553_v18  ;;  %1311 = vmatpush.bf16.msrb.mxu2 %v2537_v23 }
 0x850   :  { %1096 = vadd.xlane.f32.xlu1 %v1093_v25  ;;  %v2538_v25 = vld [vmem:[#allocation3 + $0xe4] sm:$0xf0] }
 0x851   :  { %v2541_v29 = vor.u32 %v2908_v30, %v2538_v25 }
 0x852   :  { %1312 = vmatpush.bf16.msrb.mxu2 %v2525_v36 }
 0x853   :  { %1325 = vmatpush.bf16.msra.mxu3 %v2541_v29 }
 0x857   :  { %1326 = vmatpush.bf16.msra.mxu3 %v2529_v40 }
 0x8bb   :  { %v1095_v28 = vpop.xlane.xlu0 %1094 }
 0x8bc   :  { %v1098_v35 = vmul.f32 %v1095_v28, %v3406_v11 }
 0x8be   :  { %v1100_v42 = vadd.f32 1e-05, %v1098_v35 }
 0x8c0   :  { %3042 = vrsqrt.f32 %v1100_v42  ;;  %vm1108_vm15 = vweird.f32 %v1100_v42 }
 0x8c3   :  { %v1097_v43 = vpop.xlane.xlu1 %1096 }
 0x8c4   :  { %v1099_v60 = vmul.f32 %v1097_v43, %v3406_v11 }
 0x8c6   :  { %v3043_v44 = vpop.eup %3042  ;;  %v1101_v45 = vadd.f32 1e-05, %v1099_v60 }
 0x8c7   :  { %v1103_v46 = vmul.f32 %v3043_v44, %v1100_v42  ;;  %vm1109_vm14 = vweird.f32 %v3043_v44 }
 0x8c8   :  { %3044 = vrsqrt.f32 %v1101_v45  ;;  %vm1110_vm1 = vmor %vm1108_vm15, %vm1109_vm14  ;;  %vm1118_vm7 = vweird.f32 %v1101_v45 }
 0x8c9   :  { %v1104_v16 = vmul.f32 %v3043_v44, %v1103_v46 }
 0x8cb   :  { %v1105_v47 = vmul.f32 0.5, %v1104_v16 }
 0x8cd   :  { %v1106_v48 = vsub.f32 1.5, %v1105_v47 }
 0x8ce   :  { %v3045_v50 = vpop.eup %3044 }
 0x8cf   :  { %v1107_v51 = vmul.f32 %v3043_v44, %v1106_v48  ;;  %v1113_v52 = vmul.f32 %v3045_v50, %v1101_v45  ;;  %vm1119_vm3 = vweird.f32 %v3045_v50 }
 0x8d0   :  { %vm1120_vm8 = vmor %vm1118_vm7, %vm1119_vm3 }
 0x8d1   :  { %v1114_v53 = vmul.f32 %v3045_v50, %v1113_v52  ;;  %v1111_v55 = vsel %vm1110_vm1, %v3043_v44, %v1107_v51  ;;  %vm2173_vm1 = vcmask 1041409  }
 0x8d2   :  { %v1122_v58 = vmul.f32 %v1111_v55, %v3435_v21 }
 0x8d3   :  { %v1115_v56 = vmul.f32 0.5, %v1114_v53 }
 0x8d4   :  { %v1127_v1 = vmul.f32 %v2995_v59, %v1122_v58 }
 0x8d5   :  { %v1116_v57 = vsub.f32 1.5, %v1115_v56 }
 0x8d6   :  { %v3454_v4 = vadd.f32 %v2996_v2, %v1127_v1 }
 0x8d7   :  { %v1117_v61 = vmul.f32 %v3045_v50, %v1116_v57 }
 0x8d9   :  { %v1121_v62 = vsel %vm1120_vm8, %v3045_v50, %v1117_v61 }
 0x8da   :  { %v1123_v0 = vmul.f32 %v1121_v62, %v3440_v24  ;;  %v2521_v24 = vld [vmem:[%s3629_s2 + $0x3] sm:$0x7] }
 0x8db   :  { %v1173_v7 = vperm.slane %v2521_v24, 2  ;;  %v1171_v14 = vperm.slane %v2521_v24, 0  ;;  %v1172_v63 = vperm.slane %v2521_v24, 1 }
 0x8dc   :  { %v1128_v3 = vmul.f32 %v2995_v59, %v1123_v0 }
 0x8de   :  { %v3456_v5 = vadd.f32 %v2996_v2, %v1128_v3 }
 0x8e0   :  { %v1134_v21 = vpack.c.bf16 %v3456_v5, %v3454_v4 }
 0x8e2   :  { %1313 = vmatmul.bf16.vlgmr.msrb.gmra.mxu2 %v1134_v21  ;;  %1327 = vmatmul.bf16.vlgmr.msra.gmra.mxu3 %v1134_v21 }
 0x8e3   :  { %1341 = vmatmul.bf16.vlgmr.msra.gmra.mxu0 %v1134_v21 }
 0x960   :  { %v1342_v6 = vpop.f32.mrf.mxu0 }
 0x961   :  { %v1343_v12 = vadd.f32 %v1342_v6, %v1173_v7 }
 0x965   :  { %v1314_v8 = vpop.f32.mrf.mxu2  ;;  %v1328_v9 = vpop.f32.mrf.mxu3 }
 0x966   :  { %v1315_v19 = vadd.f32 %v1314_v8, %v1171_v14  ;;  %v1329_v20 = vadd.f32 %v1328_v9, %v1172_v63 }
 0x968   :  { %v1344_v10 = vpop.f32.mrf.mxu0 }
 0x969   :  { %v1345_v13 = vadd.f32 %v1344_v10, %v1173_v7 }
 0x96b   :  { %v3463_v15 = vpack.c.bf16 %v1345_v13, %v1343_v12 }
 0x96d   :  { %1403 = vmatpush.bf16.msra.mxu2 %v3463_v15  ;;  %v1316_v17 = vpop.f32.mrf.mxu2  ;;  %v1330_v18 = vpop.f32.mrf.mxu3 }
 0x96e   :  { %v1317_v22 = vadd.f32 %v1316_v17, %v1171_v14  ;;  %v1331_v30 = vadd.f32 %v1330_v18, %v1172_v63 }
 0x970   :  { %v1347_v23 = vpack.c.bf16 %v1317_v22, %v1315_v19  ;;  %v1348_v25 = vpack.c.bf16 %v1331_v30, %v1329_v20 }
 0x972   :  { %1494 = vrot.lane.b32.xlu1 %v1348_v25, %s3195_s23  ;;  %1416 = vrot.lane.b32.xlu2 %v1348_v25, %s3197_s26  ;;  %v1353_v26 = vsel %vm335_vm0, %v1348_v25, 0 }
 0x973   :  { %1413 = vrot.lane.b32.xlu0 %v1347_v23, %s3197_s26  ;;  %1362 = vmatpush.bf16.xpose.msrb.mxu1 %v1353_v26 }
 0x97a   :  { %1569 = vrot.lane.b32.xlu1 %v1347_v23, %s3198_s27  ;;  %1492 = vrot.lane.b32.xlu2 %v1347_v23, %s3195_s23 }
 0x97b   :  { %1571 = vrot.lane.b32.xlu0 %v1348_v25, %s3198_s27  ;;  %2618 = vmatmul.msk.bf16.vlgmr.msrb.gmra.mxu1 %vm335_vm0, %v1347_v23 }
 0x9cc   :  { %v1417_v27 = vpop.permute.xlu2 %1416 }
 0x9cd   :  { %v1422_v28 = vsel %vm335_vm0, %v1417_v27, 0 }
 0x9ce   :  { %1431 = vmatpush.bf16.xpose.msrb.mxu3 %v1422_v28 }
 0x9d4   :  { %v1493_v33 = vpop.permute.xlu2 %1492 }
 0x9e4   :  { %v1495_v29 = vpop.permute.xlu1 %1494 }
 0x9e5   :  { %v1500_v31 = vsel %vm335_vm0, %v1495_v29, 0  ;;  %v1414_v32 = vpop.permute.xlu0 %1413 }
 0x9e6   :  { %2620 = vmatmul.msk.bf16.vlgmr.msrb.gmra.mxu3 %vm335_vm0, %v1414_v32  ;;  %1509 = vmatpush.bf16.xpose.msra.mxu1 %v1500_v31 }
 0x9ec   :  { %v1570_v36 = vpop.permute.xlu1 %1569 }
 0x9ed   :  { %v1572_v34 = vpop.permute.xlu0 %1571  ;;  %2622 = vmatmul.msk.bf16.vlgmr.msra.gmra.mxu1 %vm335_vm0, %v1493_v33 }
 0x9ee   :  { %v1577_v35 = vsel %vm335_vm0, %v1572_v34, 0 }
 0x9ef   :  { %1586 = vmatpush.bf16.xpose.msra.mxu3 %v1577_v35 }
 0x9f6   :  { %2624 = vmatmul.msk.bf16.vlgmr.msra.gmra.mxu3 %vm335_vm0, %v1570_v36 }
 0x9f8   :  { %v1364_v37 = vpop.f32.mrf.mxu1 }
 0x9f9   :  { %v1365_v38 = vadd.f32 %v1364_v37, %v3318_v49 }
 0x9fb   :  { %v1369_v39 = vsel %vm356_vm2, %v1365_v38, -inf }
 0x9fc   :  { %1370 = vmax.xlane.f32.xlu0 %v1369_v39 }
 0xa00   :  { %v1366_v40 = vpop.f32.mrf.mxu1 }
 0xa01   :  { %v1367_v41 = vadd.f32 %v1366_v40, %v3322_v54 }
 0xa03   :  { %v1372_v42 = vsel %vm356_vm2, %v1367_v41, -inf }
 0xa04   :  { %1373 = vmax.xlane.f32.xlu2 %v1372_v42 }
 0xa69   :  { %v1433_v43 = vpop.f32.mrf.mxu3 }
 0xa6a   :  { %v1434_v60 = vadd.f32 %v1433_v43, %v3318_v49  ;;  %v1511_v44 = vpop.f32.mrf.mxu1 }
 0xa6b   :  { %v1512_v45 = vadd.f32 %v1511_v44, %v3318_v49 }
 0xa6c   :  { %v1438_v46 = vsel %vm356_vm2, %v1434_v60, -inf }
 0xa6d   :  { %1439 = vmax.xlane.f32.xlu1 %v1438_v46  ;;  %v1516_v16 = vsel %vm356_vm2, %v1512_v45, -inf }
 0xa6e   :  { %1517 = vmax.xlane.f32.xlu2 %v1516_v16 }
 0xa6f   :  { %v1371_v47 = vpop.xlane.xlu0 %1370 }
 0xa70   :  { %v1375_v48 = vsub.f32 %v1365_v38, %v1371_v47 }
 0xa71   :  { %v1435_v50 = vpop.f32.mrf.mxu3 }
 0xa72   :  { %v1377_v51 = vmul.f32 1.442695, %v1375_v48  ;;  %v1436_v52 = vadd.f32 %v1435_v50, %v3322_v54  ;;  %v1513_v53 = vpop.f32.mrf.mxu1 }
 0xa73   :  { %v1514_v55 = vadd.f32 %v1513_v53, %v3322_v54 }
 0xa74   :  { %3046 = vpow2.f32 %v1377_v51  ;;  %v1441_v56 = vsel %vm356_vm2, %v1436_v52, -inf }
 0xa75   :  { %1442 = vmax.xlane.f32.xlu0 %v1441_v56  ;;  %v1519_v57 = vsel %vm356_vm2, %v1514_v55, -inf }
 0xa76   :  { %1520 = vmax.xlane.f32.xlu1 %v1519_v57 }
 0xa77   :  { %v1374_v58 = vpop.xlane.xlu2 %1373 }
 0xa78   :  { %v1376_v59 = vsub.f32 %v1367_v41, %v1374_v58 }
 0xa79   :  { %v1588_v61 = vpop.f32.mrf.mxu3 }
 0xa7a   :  { %v3047_v62 = vpop.eup %3046  ;;  %v1379_v0 = vmul.f32 1.442695, %v1376_v59  ;;  %v1589_v1 = vadd.f32 %v1588_v61, %v3318_v49 }
 0xa7b   :  { %v1381_v3 = vsel %vm356_vm2, %v3047_v62, 0.0 }
 0xa7c   :  { %3048 = vpow2.f32 %v1379_v0  ;;  %v1593_v2 = vsel %vm356_vm2, %v1589_v1, -inf }
 0xa7d   :  { %1594 = vmax.xlane.f32.xlu0 %v1593_v2 }
 0xa7e   :  { %1382 = vadd.xlane.f32.xlu1 %v1381_v3 }
 0xa81   :  { %v1590_v21 = vpop.f32.mrf.mxu3 }
 0xa82   :  { %v3049_v6 = vpop.eup %3048  ;;  %v1591_v24 = vadd.f32 %v1590_v21, %v3322_v54 }
 0xa83   :  { %v1384_v7 = vsel %vm356_vm2, %v3049_v6, 0.0 }
 0xa84   :  { %v1596_v8 = vsel %vm356_vm2, %v1591_v24, -inf }
 0xa85   :  { %1597 = vmax.xlane.f32.xlu2 %v1596_v8  ;;  %1385 = vadd.xlane.f32.xlu0 %v1384_v7 }
 0xa99   :  { %1462 = vrot.lane.b32.xlu0 %v3463_v15, %s3197_s26 }
 0xaa1   :  { %1616 = vrot.lane.b32.xlu0 %v3463_v15, %s3198_s27 }
 0xae0   :  { %v1440_v49 = vpop.xlane.xlu1 %1439 }
 0xae1   :  { %v1518_v9 = vpop.xlane.xlu2 %1517  ;;  %v1444_v12 = vsub.f32 %v1434_v60, %v1440_v49 }
 0xae2   :  { %v1522_v10 = vsub.f32 %v1512_v45, %v1518_v9 }
 0xae3   :  { %v1446_v14 = vmul.f32 1.442695, %v1444_v12 }
 0xae4   :  { %v1524_v13 = vmul.f32 1.442695, %v1522_v10 }
 0xae6   :  { %3050 = vpow2.f32 %v1524_v13 }
 0xae7   :  { %3052 = vpow2.f32 %v1446_v14 }
 0xae8   :  { %v1443_v54 = vpop.xlane.xlu0 %1442 }
 0xae9   :  { %v1445_v63 = vsub.f32 %v1436_v52, %v1443_v54  ;;  %v1521_v17 = vpop.xlane.xlu1 %1520 }
 0xaea   :  { %v1523_v19 = vsub.f32 %v1514_v55, %v1521_v17  ;;  %v2936_v17 = vld [vmem:[%s3630_s3 + $0x78] sm:$0xff] }
 0xaeb   :  { %v1448_v18 = vmul.f32 1.442695, %v1445_v63  ;;  %1719 = vmatpush.bf16.msrb.mxu1 %v2936_v17  ;;  %v2942_v17 = vld [vmem:[#allocation6 + $0xa4] sm:$0xf0] }
 0xaec   :  { %v3502_v20 = vpop.eup %3050  ;;  %v1526_v30 = vmul.f32 1.442695, %v1523_v19  ;;  %v2934_v19 = vld [vmem:[%s3630_s3 + $0x68] sm:$0xff] }
 0xaed   :  { %3054 = vpow2.f32 %v1448_v18  ;;  %v1528_v22 = vsel %vm356_vm2, %v3502_v20, 0.0  ;;  %v3053_v26 = vpop.eup %3052  ;;  %v2935_v18 = vld [vmem:[%s3630_s3 + $0x70] sm:$0xff] }
 0xaee   :  { %1529 = vadd.xlane.f32.xlu2 %v1528_v22  ;;  %3056 = vpow2.f32 %v1526_v30  ;;  %v1450_v32 = vsel %vm356_vm2, %v3053_v26, 0.0  ;;  %v2932_v22 = vld [vmem:[%s3630_s3 + $0x58] sm:$0xff]  ;;  %v2931_v30 = vld [vmem:[%s3630_s3 + $0x50] sm:$0xff] }
 0xaef   :  { %1720 = vmatpush.bf16.msrb.mxu1 %v2935_v18  ;;  %v2941_v18 = vld [vmem:[#allocation6 + $0xa4] sm:$0xf] }
 0xaf0   :  { %v1595_v23 = vpop.xlane.xlu0 %1594 }
 0xaf1   :  { %v1599_v25 = vsub.f32 %v1589_v1, %v1595_v23  ;;  %v1383_v29 = vpop.xlane.xlu1 %1382  ;;  %v2930_v23 = vld [vmem:[%s3630_s3 + $0x48] sm:$0xff] }
 0xaf3   :  { %v3055_v27 = vpop.eup %3054  ;;  %v1601_v28 = vmul.f32 1.442695, %v1599_v25  ;;  %1721 = vmatpush.bf16.msrb.mxu1 %v2934_v19 }
 0xaf4   :  { %v1453_v31 = vsel %vm356_vm2, %v3055_v27, 0.0  ;;  %v3057_v35 = vpop.eup %3056 }
 0xaf5   :  { %3058 = vpow2.f32 %v1601_v28  ;;  %1454 = vadd.xlane.f32.xlu1 %v1453_v31  ;;  %v1531_v39 = vsel %vm356_vm2, %v3057_v35, 0.0 }
 0xaf6   :  { %1451 = vadd.xlane.f32.xlu2 %v1450_v32  ;;  %3060 = vrcp.f32 %v1383_v29 }
 0xaf8   :  { %v1598_v33 = vpop.xlane.xlu2 %1597  ;;  %v1386_v34 = vpop.xlane.xlu0 %1385 }
 0xaf9   :  { %v1600_v36 = vsub.f32 %v1591_v24, %v1598_v33  ;;  %3062 = vrcp.f32 %v1386_v34 }
 0xafb   :  { %v3059_v37 = vpop.eup %3058  ;;  %v1603_v38 = vmul.f32 1.442695, %v1600_v36  ;;  %v2997_v36 = vld [vmem:[%s3631_s4 + $0x1] ss:$0 sm:$0xff] }
 0xafc   :  { %v3061_v40 = vpop.eup %3060  ;;  %v1605_v41 = vsel %vm356_vm2, %v3059_v37, 0.0 }
 0xafd   :  { %3064 = vpow2.f32 %v1603_v38  ;;  %1532 = vadd.xlane.f32.xlu1 %v1531_v39  ;;  %v1389_v43 = vmul.f32 %v3061_v40, %v3047_v62 }
 0xafe   :  { %1606 = vadd.xlane.f32.xlu2 %v1605_v41 }
 0xaff   :  { %v3063_v42 = vpop.eup %3062 }
 0xb00   :  { %v1390_v60 = vmul.f32 %v3063_v42, %v3049_v6 }
 0xb02   :  { %v1391_v44 = vpack.c.bf16 %v1390_v60, %v1389_v43 }
 0xb03   :  { %v3065_v45 = vpop.eup %3064 }
 0xb04   :  { %2619 = vmatmul.msk.bf16.vlgmr.msra.gmra.mxu2 %vm356_vm2, %v1391_v44  ;;  %v1608_v46 = vsel %vm356_vm2, %v3065_v45, 0.0 }
 0xb05   :  { %1609 = vadd.xlane.f32.xlu1 %v1608_v46 }
 0xb0b   :  { %v1463_v16 = vpop.permute.xlu0 %1462 }
 0xb0c   :  { %1475 = vmatpush.bf16.msrb.mxu0 %v1463_v16 }
 0xb13   :  { %v1617_v47 = vpop.permute.xlu0 %1616 }
 0xb14   :  { %1629 = vmatpush.bf16.msra.mxu0 %v1617_v47 }
 0xb16   :  { %1539 = vrot.lane.b32.xlu2 %v3463_v15, %s3195_s23 }
 0xb61   :  { %v1530_v48 = vpop.xlane.xlu2 %1529 }
 0xb68   :  { %v1455_v50 = vpop.xlane.xlu1 %1454 }
 0xb69   :  { %3066 = vrcp.f32 %v1455_v50  ;;  %v1452_v51 = vpop.xlane.xlu2 %1451  ;;  %v2951_v50 = vld [vmem:[#allocation6 + $0xf4] sm:$0xf] }
 0xb6a   :  { %3068 = vrcp.f32 %v1452_v51 }
 0xb6b   :  { %3070 = vrcp.f32 %v1530_v48  ;;  %v2952_v48 = vld [vmem:[#allocation6 + $0xf4] sm:$0xf0] }
 0xb6f   :  { %v3067_v52 = vpop.eup %3066 }
 0xb70   :  { %v3069_v53 = vpop.eup %3068  ;;  %v1533_v55 = vpop.xlane.xlu1 %1532  ;;  %v1459_v56 = vmul.f32 %v3067_v52, %v3055_v27  ;;  %v2738_v52 = vld [vmem:[#allocation6 + $0xf8] sm:$0xf0] }
 0xb71   :  { %v1458_v57 = vmul.f32 %v3069_v53, %v3053_v26  ;;  %3072 = vrcp.f32 %v1533_v55  ;;  %v1607_v58 = vpop.xlane.xlu2 %1606  ;;  %v3071_v61 = vpop.eup %3070  ;;  %v2929_v26 = vld [vmem:[%s3630_s3 + $0x40] sm:$0xff]  ;;  %v2741_v53 = vor.u32 %v2951_v50, %v2738_v52  ;;  %v2728_v55 = vld [vmem:[#allocation6 + $0xe0] sm:$0xf] }
 0xb72   :  { %3074 = vrcp.f32 %v1607_v58  ;;  %v1536_v1 = vmul.f32 %v3071_v61, %v3502_v20  ;;  %v2933_v20 = vld [vmem:[%s3630_s3 + $0x60] sm:$0xff]  ;;  %v2965_v52 = vld [vmem:[#allocation8 + $0xe0] sm:$0xff] }
 0xb73   :  { %v1460_v59 = vpack.c.bf16 %v1459_v56, %v1458_v57  ;;  %1722 = vmatpush.bf16.msrb.mxu1 %v2933_v20  ;;  %1908 = vmatpush.bf16.msrb.mxu3 %v2741_v53  ;;  %v2950_v56 = vld [vmem:[#allocation6 + $0xe4] sm:$0xf0]  ;;  %v2949_v57 = vld [vmem:[#allocation6 + $0xe4] sm:$0xf]  ;;  %v2698_v20 = vld [vmem:[#allocation6 + $0xa8] sm:$0xf0] }
 0xb74   :  { %v2729_v58 = vor.u32 %v2950_v56, %v2728_v55 }
 0xb75   :  { %2621 = vmatmul.msk.bf16.vlgmr.msrb.gmra.mxu0 %vm356_vm2, %v1460_v59  ;;  %v2730_v59 = vld [vmem:[#allocation6 + $0xe8] sm:$0xf0] }
 0xb76   :  { %v2733_v61 = vor.u32 %v2949_v57, %v2730_v59 }
 0xb77   :  { %v3073_v62 = vpop.eup %3072  ;;  %1723 = vmatpush.bf16.msrb.mxu1 %v2932_v22  ;;  %v2701_v22 = vor.u32 %v2941_v18, %v2698_v20 }
 0xb78   :  { %v1537_v0 = vmul.f32 %v3073_v62, %v3057_v35  ;;  %v1610_v15 = vpop.xlane.xlu1 %1609  ;;  %v3075_v21 = vpop.eup %3074  ;;  %1909 = vmatpush.bf16.msrb.mxu3 %v2733_v61  ;;  %v2720_v62 = vld [vmem:[#allocation6 + $0xd0] sm:$0xf] }
 0xb79   :  { %3076 = vrcp.f32 %v1610_v15  ;;  %v1540_v2 = vpop.permute.xlu2 %1539  ;;  %v1613_v7 = vmul.f32 %v3075_v21, %v3059_v37  ;;  %v2947_v15 = vld [vmem:[#allocation6 + $0xd4] sm:$0xf]  ;;  %v2712_v21 = vld [vmem:[#allocation6 + $0xc0] sm:$0xf] }
 0xb7a   :  { %1552 = vmatpush.bf16.msrb.mxu2 %v1540_v2  ;;  %v1538_v3 = vpack.c.bf16 %v1537_v0, %v1536_v1  ;;  %v2948_v0 = vld [vmem:[#allocation6 + $0xd4] sm:$0xf0]  ;;  %v2722_v2 = vld [vmem:[#allocation6 + $0xd8] sm:$0xf0] }
 0xb7b   :  { %1724 = vmatpush.bf16.msrb.mxu1 %v2931_v30  ;;  %v2721_v1 = vor.u32 %v2948_v0, %v2720_v62  ;;  %v2688_v30 = vld [vmem:[#allocation6 + $0x90] sm:$0xf] }
 0xb7d   :  { %2623 = vmatmul.msk.bf16.vlgmr.msrb.gmra.mxu2 %vm356_vm2, %v1538_v3  ;;  %v2725_v3 = vor.u32 %v2947_v15, %v2722_v2  ;;  %v2998_v15 = vld [vmem:[%s3636_s9 + $0x1] ss:$0 sm:$0xff] }
 0xb7f   :  { %v3077_v6 = vpop.eup %3076  ;;  %1725 = vmatpush.bf16.msrb.mxu1 %v2930_v23  ;;  %1910 = vmatpush.bf16.msrb.mxu3 %v2725_v3  ;;  %v2940_v23 = vld [vmem:[#allocation6 + $0x94] sm:$0xf0] }
 0xb80   :  { %v1614_v24 = vmul.f32 %v3077_v6, %v3065_v45  ;;  %v2946_v6 = vld [vmem:[#allocation6 + $0xc4] sm:$0xf0] }
 0xb82   :  { %v1615_v8 = vpack.c.bf16 %v1614_v24, %v1613_v7  ;;  %v2945_v24 = vld [vmem:[#allocation6 + $0xc4] sm:$0xf]  ;;  %v2713_v7 = vor.u32 %v2946_v6, %v2712_v21  ;;  %v2999_v6 = vld [vmem:[%s3637_s10 + $0x1] ss:$0 sm:$0xff]  ;;  %s2246_s10 = sshll.u32 %s3642_s15, 4  ;;  %s2247_s10 = int_to_ptr.hbm [resolvable:$true] %s2246_s10 }
 0xb83   :  { %1726 = vmatpush.bf16.msrb.mxu1 %v2929_v26  ;;  %v2689_v26 = vor.u32 %v2940_v23, %v2688_v30 }
 0xb85   :  { %2625 = vmatmul.msk.bf16.vlgmr.msra.gmra.mxu0 %vm356_vm2, %v1615_v8  ;;  %v2714_v8 = vld [vmem:[#allocation6 + $0xc8] sm:$0xf0] }
 0xb87   :  { %v1405_v49 = vpop.f32.mrf.mxu2 }
 0xb88   :  { %1410 = vst.msk [vmem:[#allocation2] sm:$0xff] %vm335_vm0, %v1405_v49  ;;  %v2717_v49 = vor.u32 %v2945_v24, %v2714_v8 }
 0xb8a   :  { %1911 = vmatpush.bf16.msrb.mxu3 %v2717_v49 }
 0xb8f   :  { %v1407_v9 = vpop.f32.mrf.mxu2 }
 0xb90   :  { %1411 = vst.msk [vmem:[#allocation2 + $0x8] sm:$0xff] %vm335_vm0, %v1407_v9  ;;  %v2704_v9 = vld [vmem:[#allocation6 + $0xb0] sm:$0xf] }
 0xbf2   :  { %v1477_v10 = vpop.f32.mrf.mxu0 }
 0xbf3   :  { %1484 = vrot.lane.b32.xlu1 %v1477_v10, %s3198_s27  ;;  %v2944_v10 = vld [vmem:[#allocation6 + $0xb4] sm:$0xf0] }
 0xbfa   :  { %v1479_v12 = vpop.f32.mrf.mxu0 }
 0xc00   :  { %v1554_v13 = vpop.f32.mrf.mxu2 }
 0xc01   :  { %1561 = vrot.lane.b32.xlu0 %v1554_v13, %s3195_s23  ;;  %v2705_v13 = vor.u32 %v2944_v10, %v2704_v9  ;;  %v2964_v9 = vld [vmem:[#allocation8 + $0xd8] sm:$0xff]  ;;  %v2955_v10 = vld [vmem:[#allocation8 + $0x90] sm:$0xff] }
 0xc02   :  { %v1631_v14 = vpop.f32.mrf.mxu0 }
 0xc08   :  { %v1556_v54 = vpop.f32.mrf.mxu2 }
 0xc09   :  { %1563 = vrot.lane.b32.xlu2 %v1556_v54, %s3195_s23  ;;  %1486 = vrot.lane.b32.xlu0 %v1479_v12, %s3198_s27  ;;  %v2943_v12 = vld [vmem:[#allocation6 + $0xb4] sm:$0xf] }
 0xc0a   :  { %v1633_v63 = vpop.f32.mrf.mxu0 }
 0xc0b   :  { %1640 = vrot.lane.b32.xlu1 %v1633_v63, %s3197_s26  ;;  %v2696_v63 = vld [vmem:[#allocation6 + $0xa0] sm:$0xf] }
 0xc0c   :  { %v2697_v19 = vor.u32 %v2942_v17, %v2696_v63  ;;  %v2677_v63 = vld [vmem:[%s3633_s6 + $0x2] sm:$0x3] }
 0xc0d   :  { %v1811_v20 = vperm.slane %v2677_v63, 1 }
 0xc11   :  { %1638 = vrot.lane.b32.xlu0 %v1631_v14, %s3197_s26  ;;  %v2706_v14 = vld [vmem:[#allocation6 + $0xb8] sm:$0xf0] }
 0xc12   :  { %v2709_v54 = vor.u32 %v2943_v12, %v2706_v14  ;;  %v2963_v12 = vld [vmem:[#allocation8 + $0xd0] sm:$0xff]  ;;  %v2953_v14 = vld [vmem:[#allocation8 + $0x80] sm:$0xff] }
 0xc14   :  { %1912 = vmatpush.bf16.msrb.mxu3 %v2709_v54  ;;  %v2961_v54 = vld [vmem:[#allocation8 + $0xc0] sm:$0xff] }
 0xc18   :  { %1913 = vmatpush.bf16.msrb.mxu3 %v2701_v22 }
 0xc63   :  { %v1564_v29 = vpop.permute.xlu2 %1563 }
 0xc65   :  { %v1485_v25 = vpop.permute.xlu1 %1484 }
 0xc66   :  { %1490 = vst.msk [vmem:[#allocation2] sm:$0xff] %vm478_vm4, %v1485_v25  ;;  %v2939_v25 = vld [vmem:[#allocation6 + $0x94] sm:$0xf] }
 0xc73   :  { %v1562_v27 = vpop.permute.xlu0 %1561 }
 0xc74   :  { %1567 = vst.msk [vmem:[#allocation2] sm:$0xff] %vm556_vm5, %v1562_v27  ;;  %v2690_v27 = vld [vmem:[#allocation6 + $0x98] sm:$0xf0] }
 0xc7b   :  { %v1487_v28 = vpop.permute.xlu0 %1486 }
 0xc7c   :  { %1491 = vst.msk [vmem:[#allocation2 + $0x8] sm:$0xff] %vm478_vm4, %v1487_v28  ;;  %v2680_v28 = vld [vmem:[#allocation6 + $0x80] sm:$0xf] }
 0xc7d   :  { %1568 = vst.msk [vmem:[#allocation2 + $0x8] sm:$0xff] %vm556_vm5, %v1564_v29  ;;  %v1641_v31 = vpop.permute.xlu1 %1640  ;;  %v2938_v29 = vld [vmem:[#allocation6 + $0x84] sm:$0xf0] }
 0xc7e   :  { %1645 = vst.msk [vmem:[#allocation2 + $0x8] sm:$0xff] %vm634_vm6, %v1641_v31 }
 0xc83   :  { %v1639_v32 = vpop.permute.xlu0 %1638 }
 0xc84   :  { %1644 = vst.msk [vmem:[#allocation2] sm:$0xff] %vm634_vm6, %v1639_v32  ;;  %v2693_v32 = vor.u32 %v2939_v25, %v2690_v27 }
 0xc85   :  { %v1647_v34 = vld [vmem:[#allocation2 + $0x8] sm:$0xff] }
 0xc86   :  { %1914 = vmatpush.bf16.msrb.mxu3 %v2693_v32 }
 0xc8b   :  { %v1646_v33 = vld [vmem:[#allocation2] sm:$0xff] }
 0xc8c   :  { %v1648_v35 = vpack.c.bf16 %v1647_v34, %v1646_v33  ;;  %v2937_v33 = vld [vmem:[#allocation6 + $0x84] sm:$0xf]  ;;  %v2682_v34 = vld [vmem:[#allocation6 + $0x88] sm:$0xf0] }
 0xc8e   :  { %1727 = vmatmul.bf16.vlgmr.msrb.gmra.mxu1 %v1648_v35 }
 0xd0b   :  { %v1728_v37 = vpop.f32.mrf.mxu1 }
 0xd0c   :  { %v1729_v38 = vadd.f32 %v2997_v36, %v1728_v37  ;;  %v2685_v37 = vor.u32 %v2937_v33, %v2682_v34 }
 0xd0e   :  { %v1733_v39 = vadd.f32 %v1729_v38, %v3454_v4  ;;  %1915 = vmatpush.bf16.msrb.mxu3 %v2685_v37 }
 0xd10   :  { %1739 = vadd.xlane.f32.xlu2 %v1733_v39 }
 0xd13   :  { %v1730_v40 = vpop.f32.mrf.mxu1 }
 0xd14   :  { %v1731_v41 = vadd.f32 %v2997_v36, %v1730_v40  ;;  %v2681_v36 = vor.u32 %v2938_v29, %v2680_v28  ;;  %v2968_v40 = vld [vmem:[#allocation8 + $0xf8] sm:$0xff] }
 0xd15   :  { %2076 = vmatpush.bf16.msra.mxu1 %v2968_v40 }
 0xd16   :  { %v1734_v42 = vadd.f32 %v1731_v41, %v3456_v5  ;;  %v2736_v5 = vld [vmem:[#allocation6 + $0xf0] sm:$0xf] }
 0xd17   :  { %v2737_v51 = vor.u32 %v2952_v48, %v2736_v5  ;;  %v2966_v5 = vld [vmem:[#allocation8 + $0xe8] sm:$0xff] }
 0xd18   :  { %1741 = vadd.xlane.f32.xlu0 %v1734_v42 }
 0xd19   :  { %1894 = vmatpush.bf16.msra.mxu2 %v2737_v51  ;;  %v2957_v51 = vld [vmem:[#allocation8 + $0xa0] sm:$0xff] }
 0xd1d   :  { %1895 = vmatpush.bf16.msra.mxu2 %v2729_v58 }
 0xd21   :  { %1896 = vmatpush.bf16.msra.mxu2 %v2721_v1 }
 0xd25   :  { %1897 = vmatpush.bf16.msra.mxu2 %v2713_v7 }
 0xd29   :  { %1898 = vmatpush.bf16.msra.mxu2 %v2705_v13  ;;  %v2962_v13 = vld [vmem:[#allocation8 + $0xc8] sm:$0xff] }
 0xd2d   :  { %1899 = vmatpush.bf16.msra.mxu2 %v2697_v19  ;;  %v1810_v19 = vperm.slane %v2677_v63, 0 }
 0xd31   :  { %1900 = vmatpush.bf16.msra.mxu2 %v2689_v26 }
 0xd35   :  { %1901 = vmatpush.bf16.msra.mxu2 %v2681_v36 }
 0xd83   :  { %v1740_v43 = vpop.xlane.xlu2 %1739 }
 0xd84   :  { %v1743_v60 = vmul.f32 %v1740_v43, %v3406_v11  ;;  %v2959_v43 = vld [vmem:[#allocation8 + $0xb0] sm:$0xff] }
 0xd86   :  { %v3562_v44 = vsub.f32 %v1733_v39, %v1743_v60  ;;  %v2960_v39 = vld [vmem:[#allocation8 + $0xb8] sm:$0xff]  ;;  %v2967_v60 = vld [vmem:[#allocation8 + $0xf0] sm:$0xff] }
 0xd87   :  { %2062 = vmatpush.bf16.msrb.mxu0 %v2960_v39  ;;  %2077 = vmatpush.bf16.msra.mxu1 %v2967_v60 }
 0xd88   :  { %v1747_v45 = vmul.f32 %v3562_v44, %v3562_v44 }
 0xd8a   :  { %1749 = vadd.xlane.f32.xlu1 %v1747_v45 }
 0xd8b   :  { %v1742_v46 = vpop.xlane.xlu0 %1741  ;;  %2063 = vmatpush.bf16.msrb.mxu0 %v2959_v43  ;;  %2078 = vmatpush.bf16.msra.mxu1 %v2966_v5 }
 0xd8c   :  { %v1744_v16 = vmul.f32 %v1742_v46, %v3406_v11 }
 0xd8e   :  { %v3567_v47 = vsub.f32 %v1734_v42, %v1744_v16 }
 0xd8f   :  { %2079 = vmatpush.bf16.msra.mxu1 %v2965_v52 }
 0xd90   :  { %v1748_v4 = vmul.f32 %v3567_v47, %v3567_v47 }
 0xd92   :  { %1751 = vadd.xlane.f32.xlu2 %v1748_v4  ;;  %v2958_v4 = vld [vmem:[#allocation8 + $0xa8] sm:$0xff] }
 0xd93   :  { %2064 = vmatpush.bf16.msrb.mxu0 %v2958_v4  ;;  %2080 = vmatpush.bf16.msra.mxu1 %v2964_v9 }
 0xd97   :  { %2065 = vmatpush.bf16.msrb.mxu0 %v2957_v51  ;;  %2081 = vmatpush.bf16.msra.mxu1 %v2963_v12 }
 0xd9b   :  { %2082 = vmatpush.bf16.msra.mxu1 %v2962_v13 }
 0xd9f   :  { %2083 = vmatpush.bf16.msra.mxu1 %v2961_v54 }
 0xdfd   :  { %v1750_v31 = vpop.xlane.xlu1 %1749 }
 0xdfe   :  { %v1753_v35 = vmul.f32 %v1750_v31, %v3406_v11 }
 0xe00   :  { %v1755_v38 = vadd.f32 1e-05, %v1753_v35  ;;  %v3000_v35 = vld [vmem:[%s3635_s8 + $0x1] ss:$0 sm:$0xff] }
 0xe02   :  { %3078 = vrsqrt.f32 %v1755_v38  ;;  %vm1763_vm2 = vweird.f32 %v1755_v38 }
 0xe05   :  { %v1752_v41 = vpop.xlane.xlu2 %1751 }
 0xe06   :  { %v1754_v42 = vmul.f32 %v1752_v41, %v3406_v11 }
 0xe08   :  { %v3079_v45 = vpop.eup %3078  ;;  %v1756_v46 = vadd.f32 1e-05, %v1754_v42 }
 0xe09   :  { %v1758_v16 = vmul.f32 %v3079_v45, %v1755_v38  ;;  %vm1764_vm0 = vweird.f32 %v3079_v45 }
 0xe0a   :  { %3080 = vrsqrt.f32 %v1756_v46  ;;  %vm1765_vm4 = vmor %vm1763_vm2, %vm1764_vm0  ;;  %vm1773_vm6 = vweird.f32 %v1756_v46 }
 0xe0b   :  { %v1759_v48 = vmul.f32 %v3079_v45, %v1758_v16 }
 0xe0d   :  { %v1760_v50 = vmul.f32 0.5, %v1759_v48 }
 0xe0f   :  { %v1761_v53 = vsub.f32 1.5, %v1760_v50 }
 0xe10   :  { %v3081_v55 = vpop.eup %3080 }
 0xe11   :  { %v1762_v56 = vmul.f32 %v3079_v45, %v1761_v53  ;;  %v1768_v57 = vmul.f32 %v3081_v55, %v1756_v46  ;;  %vm1774_vm5 = vweird.f32 %v3081_v55  ;;  %v2976_v53 = vld [vmem:[%s3640_s13 + $0x38] sm:$0xff] }
 0xe12   :  { %vm1775_vm9 = vmor %vm1773_vm6, %vm1774_vm5  ;;  %2225 = vmatpush.bf16.msrb.mxu2 %v2976_v53 }
 0xe13   :  { %v1769_v58 = vmul.f32 %v3081_v55, %v1768_v57  ;;  %v1766_v59 = vsel %vm1765_vm4, %v3079_v45, %v1762_v56  ;;  %v2974_v56 = vld [vmem:[%s3640_s13 + $0x28] sm:$0xff]  ;;  %v2973_v57 = vld [vmem:[%s3640_s13 + $0x20] sm:$0xff] }
 0xe14   :  { %v1777_v0 = vmul.f32 %v1766_v59, %v3562_v44  ;;  %v2956_v44 = vld [vmem:[#allocation8 + $0x98] sm:$0xff] }
 0xe15   :  { %v1770_v61 = vmul.f32 0.5, %v1769_v58  ;;  %2066 = vmatpush.bf16.msrb.mxu0 %v2956_v44  ;;  %v2972_v58 = vld [vmem:[%s3640_s13 + $0x18] sm:$0xff] }
 0xe16   :  { %v1782_v21 = vmul.f32 %v2998_v15, %v1777_v0 }
 0xe17   :  { %v1771_v62 = vsub.f32 1.5, %v1770_v61 }
 0xe18   :  { %v1787_v7 = vadd.f32 %v2999_v6, %v1782_v21 }
 0xe19   :  { %v1772_v1 = vmul.f32 %v3081_v55, %v1771_v62  ;;  %2067 = vmatpush.bf16.msrb.mxu0 %v2955_v10  ;;  %v2971_v62 = vld [vmem:[%s3640_s13 + $0x10] sm:$0xff] }
 0xe1b   :  { %v1776_v2 = vsel %vm1775_vm9, %v3081_v55, %v1772_v1  ;;  %v2975_v55 = vld [vmem:[%s3640_s13 + $0x30] sm:$0xff] }
 0xe1c   :  { %v1778_v3 = vmul.f32 %v1776_v2, %v3567_v47  ;;  %v2954_v47 = vld [vmem:[#allocation8 + $0x88] sm:$0xff]  ;;  %2226 = vmatpush.bf16.msrb.mxu2 %v2975_v55  ;;  %v2969_v2 = vld [vmem:[%s3640_s13] sm:$0xff] }
 0xe1d   :  { %2068 = vmatpush.bf16.msrb.mxu0 %v2954_v47 }
 0xe1e   :  { %v1783_v24 = vmul.f32 %v2998_v15, %v1778_v3  ;;  %v2970_v15 = vld [vmem:[%s3640_s13 + $0x8] sm:$0xff] }
 0xe20   :  { %v1788_v8 = vadd.f32 %v2999_v6, %v1783_v24  ;;  %2227 = vmatpush.bf16.msrb.mxu2 %v2974_v56 }
 0xe21   :  { %2069 = vmatpush.bf16.msrb.mxu0 %v2953_v14 }
 0xe22   :  { %v1789_v49 = vpack.c.bf16 %v1788_v8, %v1787_v7 }
 0xe24   :  { %1902 = vmatmul.bf16.vlgmr.msra.gmra.mxu2 %v1789_v49  ;;  %1916 = vmatmul.bf16.vlgmr.msrb.gmra.mxu3 %v1789_v49 }
 0xe25   :  { %2228 = vmatpush.bf16.msrb.mxu2 %v2973_v57 }
 0xe29   :  { %2229 = vmatpush.bf16.msrb.mxu2 %v2972_v58 }
 0xe2d   :  { %2230 = vmatpush.bf16.msrb.mxu2 %v2971_v62 }
 0xe31   :  { %2231 = vmatpush.bf16.msrb.mxu2 %v2970_v15 }
 0xe35   :  { %2232 = vmatpush.bf16.msrb.mxu2 %v2969_v2 }
 0xea7   :  { %v1903_v17 = vpop.f32.mrf.mxu2  ;;  %v1917_v18 = vpop.f32.mrf.mxu3 }
 0xea8   :  { %v1904_v22 = vadd.f32 %v1903_v17, %v1810_v19  ;;  %v1918_v30 = vadd.f32 %v1917_v18, %v1811_v20  ;;  %v3002_v18 = vld [vmem:[%s3639_s12 + $0x1] ss:$0 sm:$0xff]  ;;  %s2244_s12 = sshll.u32 %s3201_s0, 4  ;;  %s2245_s12 = int_to_ptr.vmem [resolvable:$true] %s2244_s12 }
 0xeaa   :  { %v1922_v28 = vmax.f32 %v1904_v22, 0.0  ;;  %v1923_v29 = vmax.f32 %v1918_v30, 0.0 }
 0xeaf   :  { %v1905_v23 = vpop.f32.mrf.mxu2  ;;  %v1919_v25 = vpop.f32.mrf.mxu3 }
 0xeb0   :  { %v1906_v26 = vadd.f32 %v1905_v23, %v1810_v19  ;;  %v1920_v27 = vadd.f32 %v1919_v25, %v1811_v20 }
 0xeb2   :  { %v1924_v31 = vmax.f32 %v1906_v26, 0.0  ;;  %v1925_v32 = vmax.f32 %v1920_v27, 0.0 }
 0xeb4   :  { %v1926_v33 = vpack.c.bf16 %v1924_v31, %v1922_v28  ;;  %v1927_v34 = vpack.c.bf16 %v1925_v32, %v1923_v29 }
 0xeb6   :  { %2070 = vmatmul.bf16.vlgmr.msrb.gmra.mxu0 %v1926_v33  ;;  %2084 = vmatmul.bf16.vlgmr.msra.gmra.mxu1 %v1927_v34  ;;  %v3003_v33 = vld [vmem:[%s3641_s14] ss:$0 sm:$0xff] }
 0xf33   :  { %v2071_v36 = vpop.f32.mrf.mxu0  ;;  %v2085_v37 = vpop.f32.mrf.mxu1 }
 0xf34   :  { %v2072_v38 = vadd.f32 %v3000_v35, %v2071_v36 }
 0xf36   :  { %v2086_v39 = vadd.f32 %v2085_v37, %v2072_v38 }
 0xf38   :  { %v2090_v40 = vadd.f32 %v2086_v39, %v1787_v7 }
 0xf3a   :  { %2096 = vadd.xlane.f32.xlu1 %v2090_v40 }
 0xf3b   :  { %v2073_v41 = vpop.f32.mrf.mxu0  ;;  %v2087_v43 = vpop.f32.mrf.mxu1 }
 0xf3c   :  { %v2074_v42 = vadd.f32 %v3000_v35, %v2073_v41 }
 0xf3e   :  { %v2088_v60 = vadd.f32 %v2087_v43, %v2074_v42 }
 0xf40   :  { %v2091_v45 = vadd.f32 %v2088_v60, %v1788_v8 }
 0xf42   :  { %2098 = vadd.xlane.f32.xlu0 %v2091_v45 }
 0xfad   :  { %v2097_v46 = vpop.xlane.xlu1 %2096 }
 0xfae   :  { %v2100_v16 = vmul.f32 %v2097_v46, %v3406_v11 }
 0xfb0   :  { %v2102_v4 = vsub.f32 %v2090_v40, %v2100_v16 }
 0xfb2   :  { %v2104_v5 = vmul.f32 %v2102_v4, %v2102_v4 }
 0xfb4   :  { %2106 = vadd.xlane.f32.xlu0 %v2104_v5 }
 0xfb5   :  { %v2099_v48 = vpop.xlane.xlu0 %2098 }
 0xfb6   :  { %v2101_v50 = vmul.f32 %v2099_v48, %v3406_v11 }
 0xfb8   :  { %v2103_v51 = vsub.f32 %v2091_v45, %v2101_v50 }
 0xfba   :  { %v2105_v52 = vmul.f32 %v2103_v51, %v2103_v51 }
 0xfbc   :  { %2108 = vadd.xlane.f32.xlu2 %v2105_v52 }
0x1027   :  { %v2107_v59 = vpop.xlane.xlu0 %2106 }
0x1028   :  { %v2110_v61 = vmul.f32 %v2107_v59, %v3406_v11 }
0x102a   :  { %v2112_v0 = vadd.f32 1e-05, %v2110_v61 }
0x102c   :  { %3082 = vrsqrt.f32 %v2112_v0  ;;  %vm2120_vm11 = vweird.f32 %v2112_v0 }
0x102f   :  { %v2109_v1 = vpop.xlane.xlu2 %2108 }
0x1030   :  { %v2111_v3 = vmul.f32 %v2109_v1, %v3406_v11  ;;  %v3001_v11 = vld [vmem:[%s3638_s11 + $0x1] ss:$0 sm:$0xff] }
0x1032   :  { %v3083_v21 = vpop.eup %3082  ;;  %v2113_v6 = vadd.f32 1e-05, %v2111_v3 }
0x1033   :  { %v2115_v24 = vmul.f32 %v3083_v21, %v2112_v0  ;;  %vm2121_vm10 = vweird.f32 %v3083_v21 }
0x1034   :  { %3084 = vrsqrt.f32 %v2113_v6  ;;  %vm2122_vm12 = vmor %vm2120_vm11, %vm2121_vm10  ;;  %vm2130_vm14 = vweird.f32 %v2113_v6 }
0x1035   :  { %v2116_v7 = vmul.f32 %v3083_v21, %v2115_v24 }
0x1037   :  { %v2117_v8 = vmul.f32 0.5, %v2116_v7 }
0x1039   :  { %v2118_v49 = vsub.f32 1.5, %v2117_v8 }
0x103a   :  { %v3085_v44 = vpop.eup %3084 }
0x103b   :  { %v2119_v9 = vmul.f32 %v3083_v21, %v2118_v49  ;;  %v2125_v10 = vmul.f32 %v3085_v44, %v2113_v6  ;;  %vm2131_vm13 = vweird.f32 %v3085_v44 }
0x103c   :  { %vm2132_vm15 = vmor %vm2130_vm14, %vm2131_vm13 }
0x103d   :  { %v2123_v12 = vsel %vm2122_vm12, %v3083_v21, %v2119_v9  ;;  %v2126_v47 = vmul.f32 %v3085_v44, %v2125_v10 }
0x103e   :  { %v2134_v14 = vmul.f32 %v2123_v12, %v2102_v4 }
0x103f   :  { %v2127_v13 = vmul.f32 0.5, %v2126_v47 }
0x1040   :  { %v2139_v17 = vmul.f32 %v3001_v11, %v2134_v14 }
0x1041   :  { %v2128_v54 = vsub.f32 1.5, %v2127_v13 }
0x1042   :  { %v2144_v30 = vadd.f32 %v3002_v18, %v2139_v17 }
0x1043   :  { %v2129_v63 = vmul.f32 %v3085_v44, %v2128_v54 }
0x1044   :  { %v2146_v25 = vpack.c.bf16 %v2144_v30, %v2144_v30 }
0x1045   :  { %v2133_v19 = vsel %vm2132_vm15, %v3085_v44, %v2129_v63 }
0x1046   :  { %v2135_v20 = vmul.f32 %v2133_v19, %v2103_v51  ;;  %v2170_v28 = vunpack.c.l.b16 %v2146_v25 }
0x1048   :  { %v2140_v22 = vmul.f32 %v3001_v11, %v2135_v20 }
0x104a   :  { %v2145_v23 = vadd.f32 %v3002_v18, %v2140_v22 }
0x104c   :  { %v2147_v26 = vpack.c.bf16 %v2145_v23, %v2145_v23 }
0x104e   :  { %v2171_v27 = vunpack.c.l.b16 %v2147_v26 }
0x1050   :  { %v2172_v29 = vrot.slane %v2171_v27, 7 }
0x1052   :  { %v2174_v31 = vsel %vm2173_vm1, %v2172_v29, %v2170_v28 }
0x1053   :  { %v2175_v32 = vpack.c.b16 %v2174_v31, %v2174_v31 }
0x1055   :  { %2233 = vmatmul.bf16.vlgmr.msrb.gmra.mxu2 %v2175_v32 }
0x10d8   :  { %v2234_v34 = vpop.f32.mrf.mxu2 }
0x10d9   :  { %v2235_v35 = vadd.f32 %v3003_v33, %v2234_v34 }
0x10db   :  { %2238 = vst [vmem:[#allocation9] sm:$0x3] %v2235_v35 }
0x10dc   :  { %2249 = dma.vmem_to_hbm [thread:$0]  %s2245_s12, 32, %s2247_s10, [#allocation5]  }
0x10e0   :  { %v2236_v36 = vpop.f32.mrf.mxu2 }
0x10e1   :  { %3186 = dma.done.wait [#allocation5], 32  }
0x10e2   :  { %3187 = vsyncadd [#allocation5], 4294967264 }
0x10e3   :  { %2254 = vsyncpa [#allocation4], 1 }
0x10e4   :  { %2255 = vsyncpa [#allocation7], 1 }
0x10e5   :  { %2256 = vsyncpa [#allocation5], 1 }

</bundles_post_ra>
